<compile_context>
chip_gen: v5e
topology: v5e:2x2
jax: 0.10.0
libtpu: 0.0.40
codegen_flags: <defaults>
</compile_context>

<pallas_src>
import jax
import jax.numpy as jnp
from jax.experimental import pallas as pl
from jax.experimental.pallas import tpu as pltpu

EPS = 1e-5          # BatchNorm eps
LANE = 128          # TPU vreg lane width


def _round_up(x, m):
    return (x + m - 1) // m * m


def _device_config():
    """Per-generation VMEM budget / scoped limit / elementwise dtype / min grid."""
    kind = ""
    try:
        kind = jax.devices()[0].device_kind.lower()
    except Exception:
        pass
    if "v7" in kind:
        # 64 MiB physical VMEM; 2 TensorCores -> keep >= 2 grid steps.
        return dict(budget=40 << 20, vmem_limit=56 << 20,
                    ew_dtype=jnp.bfloat16, min_grid=2)
    if "v6" in kind:
        # 128 MiB physical; bf16-native VPU/EUP.
        return dict(budget=80 << 20, vmem_limit=100 << 20,
                    ew_dtype=jnp.bfloat16, min_grid=1)
    if "v5" in kind:
        # 128 MiB physical; no bf16 VPU/EUP -> keep elementwise math in f32.
        return dict(budget=80 << 20, vmem_limit=100 << 20,
                    ew_dtype=jnp.float32, min_grid=1)
    # Unknown generation: conservative (matches the default scoped VMEM limit).
    return dict(budget=12 << 20, vmem_limit=None,
                ew_dtype=jnp.float32, min_grid=1)


def _pick_bt(B, N, c_in_p, hd_p, c_out_p, ew_bytes, budget_bytes, min_grid=1):
    """Whole images per grid step: as many as fit the per-step VMEM budget."""
    # Grid-invariant operands; the BlockSpec pipeline double-buffers every input.
    fixed = 2 * (2 * c_in_p * hd_p                 # w1 (bf16)
                 + 2 * hd_p * c_out_p              # w2 (bf16, BN3-folded)
                 + 4 * 3 * 8 * hd_p                # b1, s1, t1 (f32, 8-sublane pad)
                 + ew_bytes * (16 + 3 * 8) * hd_p  # dww (9->16 sublanes) + dwb/s2/t2
                 + 4 * 8 * c_out_p)                # b2 (f32)
    # Per-pixel-row cost: x/out blocks (double-buffered) + live intermediates.
    per_row = (2 * 2 * c_in_p                      # x block, bf16
               + 2 * 4 * c_out_p                   # out block, f32
               + 12 * ew_bytes * hd_p              # live (Mblk, Hd) tap intermediates
               + 4 * 4 * hd_p                      # f32 conv1-epilogue temporaries
               + 4 * c_out_p)                      # f32 matmul-2 result
    avail = max(budget_bytes - fixed, per_row * N)
    bt = min(max(1, avail // (per_row * N)), B)
    if min_grid > 1:
        bt = min(bt, max(1, B // min_grid))        # keep both v7x TensorCores busy
    while B % bt:
        bt -= 1
    return bt
    # TODO(synk): for a single huge image (Bt=1 still over budget) tile over H with
    # a +/-1-row halo instead of whole images per block.


def _make_kernel(H, W, use_exact_gelu, ew_dtype):
    def gelu(v):
        # PyTorch nn.GELU() default is exact erf; the tanh approximation is the
        # default fast path here (EUP slot) and is numerically very close.
        return jax.nn.gelu(v, approximate=not use_exact_gelu)

    def kernel(x_ref, w1_ref, b1_ref, s1_ref, t1_ref,
               dww_ref, dwb_ref, s2_ref, t2_ref,
               w2_ref, b2_ref, o_ref):
        M = x_ref.shape[0]                       # Bt * H * W rows (whole images)
        HW = H * W

        # conv1 = [1x1 Conv(+bias), GELU, BatchNorm]; 1x1 conv == channel matmul.
        # MXU in bf16, f32 accumulation; epilogue in f32, then cast to ew_dtype.
        h = jnp.dot(x_ref[...], w1_ref[...], preferred_element_type=jnp.float32)
        h = gelu(h + b1_ref[...])
        h = (h * s1_ref[...] + t1_ref[...]).astype(ew_dtype)   # (M, Hd)
        # Dropout(p=0.0) is the identity.

        # Border masks from an in-kernel iota (no ri/ci inputs).  Pixel (b, i, j)
        # lives at row b*H*W + i*W + j.
        lin = jax.lax.broadcasted_iota(jnp.int32, (M, 1), 0)
        pix = lin % HW                           # flat pixel index within image
        cj = lin % W                             # column index j
        row_up = pix >= W                        # source row i-1 valid (dy = -1)
        row_dn = pix < (H - 1) * W               # source row i+1 valid (dy = +1)
        col_l = cj >= 1                          # source col j-1 valid (dx = -1)
        col_r = cj <= W - 2                      # source col j+1 valid (dx = +1)

        # Depthwise 3x3 (stride 1, pad 1) + bias + residual, as rolls + masked
        # per-channel taps.  Column-masked shifts are computed once and reused by
        # all three stencil rows: masking by the destination column *before* the
        # row roll is exact because a roll by a multiple of W preserves the column
        # index.  Cross-image / cross-block wraps are always zeroed by the masks.
        dww = dww_ref[...]                       # (9, Hd) ew_dtype; row 4 has +1.0
        zero = jnp.zeros((), ew_dtype)
        cl = jnp.where(col_l, pltpu.roll(h, 1, axis=0), zero)      # h[.., j-1]
        cr = jnp.where(col_r, pltpu.roll(h, M - 1, axis=0), zero)  # h[.., j+1]

        def wsum(a, b, c, k0):                   # one stencil row, taps k0..k0+2
            return (a * dww[k0:k0 + 1, :] + b * dww[k0 + 1:k0 + 2, :]
                    + c * dww[k0 + 2:k0 + 3, :])

        acc = wsum(cl, h, cr, 3)                                   # dy = 0 (+res.)
        up = wsum(pltpu.roll(cl, W, axis=0), pltpu.roll(h, W, axis=0),
                  pltpu.roll(cr, W, axis=0), 0)                    # dy = -1
        dn = wsum(pltpu.roll(cl, M - W, axis=0), pltpu.roll(h, M - W, axis=0),
                  pltpu.roll(cr, M - W, axis=0), 6)                # dy = +1
        acc = acc + jnp.where(row_up, up, zero) + jnp.where(row_dn, dn, zero)

        g = gelu(acc + dwb_ref[...])             # proj bias + residual + proj_act
        g = g * s2_ref[...] + t2_ref[...]        # proj_bn (eval-mode fold)

        # conv2 = 1x1 Conv(+bias); BatchNorm3 is pre-folded into (w2, b2).
        y = jnp.dot(g.astype(w2_ref.dtype), w2_ref[...],
                    preferred_element_type=jnp.float32) + b2_ref[...]
        o_ref[...] = y.astype(o_ref.dtype)

    return kernel


def conv_mlp_forward(x, params, *, H, W, use_exact_gelu=False,
                     matmul_dtype=jnp.bfloat16, ew_dtype=None):
    """Fused ConvMlp forward.  x: (B, N=H*W, C_in) -> (B, N, C_out), float32.

    Matmuls run on the MXU in `matmul_dtype` with f32 accumulation; the
    depthwise/GELU/BN elementwise phase runs in `ew_dtype` (bf16 on v6e/v7x,
    f32 on v5e by default).
    """
    B, N, C_in = x.shape
    assert N == H * W, "x must be (B, H*W, C_in)"
    Hd = params["w1"].shape[1]
    C_out = params["w2"].shape[1]

    cfg = _device_config()
    if ew_dtype is None:
        ew_dtype = cfg["ew_dtype"]

    # Pad channel dims to lane multiples (128): MXU-friendly operands and a
    # lane-dense output block (unmasked vector stores).  Zero padding is exact:
    # padded channels stay identically zero through GELU/BN/depthwise taps.
    C_in_p, Hd_p, C_out_p = (_round_up(c, LANE) for c in (C_in, Hd, C_out))

    def pad2(a, rows, cols):
        return jnp.pad(a, ((0, rows - a.shape[0]), (0, cols - a.shape[1])))

    w1 = pad2(params["w1"], C_in_p, Hd_p).astype(matmul_dtype)
    b1 = pad2(params["b1"], 1, Hd_p)
    s1 = pad2(params["s1"], 1, Hd_p)
    t1 = pad2(params["t1"], 1, Hd_p)
    # Residual (proj(x) + x) folded into the depthwise center tap: dww[4] += 1.
    dww = pad2(params["dww"].at[4].add(1.0), 9, Hd_p).astype(ew_dtype)
    dwb = pad2(params["dwb"], 1, Hd_p).astype(ew_dtype)
    s2 = pad2(params["s2"], 1, Hd_p).astype(ew_dtype)
    t2 = pad2(params["t2"], 1, Hd_p).astype(ew_dtype)
    # Fold BN3 exactly into conv2 (no nonlinearity in between):
    #   (g @ w2 + b2) * s3 + t3 == g @ (w2 * s3) + (b2 * s3 + t3)
    w2f = pad2(params["w2"] * params["s3"], Hd_p, C_out_p).astype(matmul_dtype)
    b2f = pad2(params["b2"] * params["s3"] + params["t3"], 1, C_out_p)

    # Flatten (B, N, C) -> (B*N, C): matmul M-dim = Bt*N rows per grid step.
    xf = x.reshape(B * N, C_in)
    if C_in_p != C_in:
        xf = jnp.pad(xf, ((0, 0), (0, C_in_p - C_in)))
    xf = xf.astype(matmul_dtype)

    ew_bytes = jnp.dtype(ew_dtype).itemsize
    Bt = _pick_bt(B, N, C_in_p, Hd_p, C_out_p, ew_bytes,
                  budget_bytes=cfg["budget"], min_grid=cfg["min_grid"])
    Mblk = Bt * N
    grid = (B // Bt,)

    const = lambda shape: pl.BlockSpec(shape, lambda b: (0, 0))
    in_specs = [
        pl.BlockSpec((Mblk, C_in_p), lambda b: (b, 0)),        # x rows for this step
        const((C_in_p, Hd_p)),                                 # w1
        const((1, Hd_p)), const((1, Hd_p)), const((1, Hd_p)),  # b1, s1, t1
        const((9, Hd_p)), const((1, Hd_p)),                    # dww (+residual), dwb
        const((1, Hd_p)), const((1, Hd_p)),                    # s2, t2
        const((Hd_p, C_out_p)), const((1, C_out_p)),           # w2 (BN3-folded), b2
    ]
    out_specs = pl.BlockSpec((Mblk, C_out_p), lambda b: (b, 0))

    out = pl.pallas_call(
        _make_kernel(H, W, use_exact_gelu, ew_dtype),
        grid=grid,
        in_specs=in_specs,
        out_specs=out_specs,
        out_shape=jax.ShapeDtypeStruct((B * N, C_out_p), jnp.float32),
        compiler_params=pltpu.CompilerParams(
            dimension_semantics=("parallel",),
            vmem_limit_bytes=cfg["vmem_limit"]),
    )(xf, w1, b1, s1, t1, dww, dwb, s2, t2, w2f, b2f)

    # TODO(synk): when C_out % 128 != 0 this slice is an extra HBM pass; emit bf16
    # output or keep the padded width if the consumer allows it.
    return out[:, :C_out].reshape(B, N, C_out)


def conv_mlp_reference(x, params, *, H, W, use_exact_gelu=False,
                       matmul_dtype=jnp.bfloat16, ew_dtype=jnp.float32):
    """Pure-JAX (non-Pallas) reference of the same eval-mode forward pass, with the
    same matmul / elementwise operand rounding so it is directly comparable."""
    B, N, C = x.shape
    gelu = lambda v: jax.nn.gelu(v, approximate=not use_exact_gelu)
    qm = lambda a: a.astype(matmul_dtype).astype(jnp.float32)
    qe = lambda a: a.astype(ew_dtype).astype(jnp.float32)

    h = qm(x) @ qm(params["w1"]) + params["b1"]
    h = gelu(h)
    h = qe(h * params["s1"] + params["t1"])                  # (B, N, Hd)
    Hd = h.shape[-1]

    himg = h.reshape(B, H, W, Hd)
    hpad = jnp.pad(himg, ((0, 0), (1, 1), (1, 1), (0, 0)))
    acc = jnp.zeros_like(himg)
    dww = qe(params["dww"])
    for dy in (-1, 0, 1):
        for dx in (-1, 0, 1):
            k = (dy + 1) * 3 + (dx + 1)
            acc = acc + hpad[:, 1 + dy:1 + dy + H, 1 + dx:1 + dx + W, :] * dww[k]
    g = acc.reshape(B, N, Hd) + qe(params["dwb"]) + h        # proj(x)+bias+residual
    g = gelu(g)
    g = g * qe(params["s2"]) + qe(params["t2"])

    w2f = params["w2"] * params["s3"]
    b2f = params["b2"] * params["s3"] + params["t3"]
    return qm(g) @ qm(w2f) + b2f


def make_params(key, C_in, Hd, C_out):
    """Deterministic synthetic parameters matching the module's __init__ shapes."""
    ks = jax.random.split(key, 9)

    def nrm(k, shape, scale=0.1):
        return scale * jax.random.normal(k, shape, jnp.float32)

    # TODO(synk): BatchNorm2d is implemented in inference (eval) mode: running stats
    # are folded into a per-channel scale/shift; training-mode batch statistics are
    # not modelled inside the kernel.
    def bn_fold(k, C):
        kg, kb, km, kv = jax.random.split(k, 4)
        gamma = 1.0 + 0.1 * jax.random.normal(kg, (C,), jnp.float32)
        beta = 0.1 * jax.random.normal(kb, (C,), jnp.float32)
        mean = 0.1 * jax.random.normal(km, (C,), jnp.float32)
        var = jax.random.uniform(kv, (C,), jnp.float32, minval=0.5, maxval=1.5)
        s = gamma / jnp.sqrt(var + EPS)
        t = beta - mean * s
        return s.reshape(1, C), t.reshape(1, C)

    s1, t1 = bn_fold(ks[0], Hd)
    s2, t2 = bn_fold(ks[1], Hd)
    s3, t3 = bn_fold(ks[2], C_out)
    return dict(
        w1=nrm(ks[3], (C_in, Hd)),      # conv1[0].weight (Hd, Cin, 1, 1) transposed
        b1=nrm(ks[4], (1, Hd)),         # conv1[0].bias
        s1=s1, t1=t1,                   # conv1[2] BatchNorm folded
        dww=nrm(ks[5], (9, Hd)),        # proj.weight (Hd, 1, 3, 3): k=(dy+1)*3+(dx+1)
        dwb=nrm(ks[6], (1, Hd)),        # proj.bias
        s2=s2, t2=t2,                   # proj_bn folded
        w2=nrm(ks[7], (Hd, C_out)),     # conv2[0].weight transposed
        b2=nrm(ks[8], (1, C_out)),      # conv2[0].bias
        s3=s3, t3=t3,                   # conv2[1] BatchNorm folded
    )


if __name__ == "__main__":
    B, H, W = 2, 8, 8
    N = H * W
    C_in, Hd, C_out = 16, 32, 16        # in_features, hidden_features, out_features

    key = jax.random.PRNGKey(0)
    kx, kp = jax.random.split(key)
    x = 0.5 * jax.random.normal(kx, (B, N, C_in), jnp.float32)   # forward(x, H, W)
    params = make_params(kp, C_in, Hd, C_out)

    cfg = _device_config()
    fwd = jax.jit(conv_mlp_forward,
                  static_argnames=("H", "W", "use_exact_gelu",
                                   "matmul_dtype", "ew_dtype"))
    out = jax.block_until_ready(fwd(x, params, H=H, W=W))

    ref = conv_mlp_reference(x, params, H=H, W=W, ew_dtype=cfg["ew_dtype"])
    max_err = float(jnp.max(jnp.abs(out - ref)))
    assert out.shape == (B, N, C_out) and out.dtype == jnp.float32
    assert max_err < 3e-2, f"kernel/reference mismatch: max abs err = {max_err:.3e}"
    print("KERNEL_OK")
</pallas_src>

<mosaic_0001>
module attributes {stable_mosaic.version = 11 : i64} {
  func.func @kernel(%arg0: i32, %arg1: memref<128x128xbf16, #tpu.memory_space<vmem>>, %arg2: memref<128x128xbf16, #tpu.memory_space<vmem>>, %arg3: memref<1x128xf32, #tpu.memory_space<vmem>>, %arg4: memref<1x128xf32, #tpu.memory_space<vmem>>, %arg5: memref<1x128xf32, #tpu.memory_space<vmem>>, %arg6: memref<9x128xf32, #tpu.memory_space<vmem>>, %arg7: memref<1x128xf32, #tpu.memory_space<vmem>>, %arg8: memref<1x128xf32, #tpu.memory_space<vmem>>, %arg9: memref<1x128xf32, #tpu.memory_space<vmem>>, %arg10: memref<128x128xbf16, #tpu.memory_space<vmem>>, %arg11: memref<1x128xf32, #tpu.memory_space<vmem>>, %arg12: memref<128x128xf32, #tpu.memory_space<vmem>>) attributes {dimension_semantics = [#tpu.dimension_semantics<parallel>], iteration_bounds = array<i64: 1>, scalar_prefetch = 0 : i64, scratch_operands = 0 : i64, tpu.core_type = #tpu.core_type<tc>, window_params = [{transform_indices = @transform_0, window_bounds = array<i64: 128, 128>}, {pipeline_mode = #tpu.pipeline_mode<synchronous>, transform_indices = @transform_1, window_bounds = array<i64: 128, 128>}, {pipeline_mode = #tpu.pipeline_mode<synchronous>, transform_indices = @transform_2, window_bounds = array<i64: 1, 128>}, {pipeline_mode = #tpu.pipeline_mode<synchronous>, transform_indices = @transform_3, window_bounds = array<i64: 1, 128>}, {pipeline_mode = #tpu.pipeline_mode<synchronous>, transform_indices = @transform_4, window_bounds = array<i64: 1, 128>}, {pipeline_mode = #tpu.pipeline_mode<synchronous>, transform_indices = @transform_5, window_bounds = array<i64: 9, 128>}, {pipeline_mode = #tpu.pipeline_mode<synchronous>, transform_indices = @transform_6, window_bounds = array<i64: 1, 128>}, {pipeline_mode = #tpu.pipeline_mode<synchronous>, transform_indices = @transform_7, window_bounds = array<i64: 1, 128>}, {pipeline_mode = #tpu.pipeline_mode<synchronous>, transform_indices = @transform_8, window_bounds = array<i64: 1, 128>}, {pipeline_mode = #tpu.pipeline_mode<synchronous>, transform_indices = @transform_9, window_bounds = array<i64: 128, 128>}, {pipeline_mode = #tpu.pipeline_mode<synchronous>, transform_indices = @transform_10, window_bounds = array<i64: 1, 128>}, {transform_indices = @transform_11, window_bounds = array<i64: 128, 128>}]} {
    %c0 = arith.constant 0 : index
    %c0_0 = arith.constant 0 : index
    %0 = vector.load %arg1[%c0, %c0_0] : memref<128x128xbf16, #tpu.memory_space<vmem>>, vector<128x128xbf16>
    %c0_1 = arith.constant 0 : index
    %c0_2 = arith.constant 0 : index
    %1 = vector.load %arg2[%c0_1, %c0_2] : memref<128x128xbf16, #tpu.memory_space<vmem>>, vector<128x128xbf16>
    %cst = arith.constant dense<0.000000e+00> : vector<128x128xf32>
    %2 = tpu.matmul %0, %1, %cst {dimension_numbers = #tpu.dot_dimension_numbers<[1], [0], [0], [1], [0, 0, 1, 1], [], []>} : vector<128x128xbf16>, vector<128x128xbf16>, vector<128x128xf32> -> vector<128x128xf32>
    %c0_3 = arith.constant 0 : index
    %c0_4 = arith.constant 0 : index
    %3 = vector.load %arg3[%c0_3, %c0_4] : memref<1x128xf32, #tpu.memory_space<vmem>>, vector<1x128xf32>
    %4 = vector.broadcast %3 : vector<1x128xf32> to vector<128x128xf32>
    %5 = arith.addf %2, %4 : vector<128x128xf32>
    %6 = arith.mulf %5, %5 : vector<128x128xf32>
    %7 = arith.mulf %5, %6 : vector<128x128xf32>
    %cst_5 = arith.constant 4.471500e-02 : f32
    %8 = vector.broadcast %cst_5 : f32 to vector<128x128xf32>
    %9 = arith.mulf %8, %7 : vector<128x128xf32>
    %10 = arith.addf %5, %9 : vector<128x128xf32>
    %cst_6 = arith.constant 0.797884583 : f32
    %11 = vector.broadcast %cst_6 : f32 to vector<128x128xf32>
    %12 = arith.mulf %11, %10 : vector<128x128xf32>
    %13 = math.tanh %12 : vector<128x128xf32>
    %cst_7 = arith.constant 1.000000e+00 : f32
    %14 = vector.broadcast %cst_7 : f32 to vector<128x128xf32>
    %15 = arith.addf %14, %13 : vector<128x128xf32>
    %cst_8 = arith.constant 5.000000e-01 : f32
    %16 = vector.broadcast %cst_8 : f32 to vector<128x128xf32>
    %17 = arith.mulf %16, %15 : vector<128x128xf32>
    %18 = arith.mulf %5, %17 : vector<128x128xf32>
    %c0_9 = arith.constant 0 : index
    %c0_10 = arith.constant 0 : index
    %19 = vector.load %arg4[%c0_9, %c0_10] : memref<1x128xf32, #tpu.memory_space<vmem>>, vector<1x128xf32>
    %20 = vector.broadcast %19 : vector<1x128xf32> to vector<128x128xf32>
    %21 = arith.mulf %18, %20 : vector<128x128xf32>
    %c0_11 = arith.constant 0 : index
    %c0_12 = arith.constant 0 : index
    %22 = vector.load %arg5[%c0_11, %c0_12] : memref<1x128xf32, #tpu.memory_space<vmem>>, vector<1x128xf32>
    %23 = vector.broadcast %22 : vector<1x128xf32> to vector<128x128xf32>
    %24 = arith.addf %21, %23 : vector<128x128xf32>
    %25 = tpu.iota {dimensions = array<i32: 0>} : vector<128x1xi32>
    %c64_i32 = arith.constant 64 : i32
    %c0_i32 = arith.constant 0 : i32
    %26 = arith.cmpi eq, %c64_i32, %c0_i32 : i32
    %c1_i32 = arith.constant 1 : i32
    %27 = arith.select %26, %c1_i32, %c64_i32 : i32
    %28 = vector.broadcast %27 : i32 to vector<128x1xi32>
    %29 = arith.remsi %25, %28 : vector<128x1xi32>
    %c0_i32_13 = arith.constant 0 : i32
    %30 = vector.broadcast %c0_i32_13 : i32 to vector<128x1xi32>
    %31 = arith.cmpi ne, %29, %30 : vector<128x1xi32>
    %c0_i32_14 = arith.constant 0 : i32
    %32 = vector.broadcast %c0_i32_14 : i32 to vector<128x1xi32>
    %33 = arith.cmpi slt, %29, %32 : vector<128x1xi32>
    %c0_i32_15 = arith.constant 0 : i32
    %34 = arith.cmpi slt, %27, %c0_i32_15 : i32
    %35 = vector.broadcast %34 : i1 to vector<128x1xi1>
    %36 = vector.broadcast %35 : vector<128x1xi1> to vector<128x1xi1>
    %37 = arith.xori %33, %36 : vector<128x1xi1>
    %38 = arith.andi %37, %31 : vector<128x1xi1>
    %39 = vector.broadcast %27 : i32 to vector<128x1xi32>
    %40 = arith.addi %29, %39 : vector<128x1xi32>
    %41 = arith.select %38, %40, %29 : vector<128x1xi1>, vector<128x1xi32>
    %c8_i32 = arith.constant 8 : i32
    %c0_i32_16 = arith.constant 0 : i32
    %42 = arith.cmpi eq, %c8_i32, %c0_i32_16 : i32
    %c1_i32_17 = arith.constant 1 : i32
    %43 = arith.select %42, %c1_i32_17, %c8_i32 : i32
    %44 = vector.broadcast %43 : i32 to vector<128x1xi32>
    %45 = arith.remsi %25, %44 : vector<128x1xi32>
    %c0_i32_18 = arith.constant 0 : i32
    %46 = vector.broadcast %c0_i32_18 : i32 to vector<128x1xi32>
    %47 = arith.cmpi ne, %45, %46 : vector<128x1xi32>
    %c0_i32_19 = arith.constant 0 : i32
    %48 = vector.broadcast %c0_i32_19 : i32 to vector<128x1xi32>
    %49 = arith.cmpi slt, %45, %48 : vector<128x1xi32>
    %c0_i32_20 = arith.constant 0 : i32
    %50 = arith.cmpi slt, %43, %c0_i32_20 : i32
    %51 = vector.broadcast %50 : i1 to vector<128x1xi1>
    %52 = vector.broadcast %51 : vector<128x1xi1> to vector<128x1xi1>
    %53 = arith.xori %49, %52 : vector<128x1xi1>
    %54 = arith.andi %53, %47 : vector<128x1xi1>
    %55 = vector.broadcast %43 : i32 to vector<128x1xi32>
    %56 = arith.addi %45, %55 : vector<128x1xi32>
    %57 = arith.select %54, %56, %45 : vector<128x1xi1>, vector<128x1xi32>
    %c8_i32_21 = arith.constant 8 : i32
    %58 = vector.broadcast %c8_i32_21 : i32 to vector<128x1xi32>
    %59 = arith.cmpi sge, %41, %58 : vector<128x1xi32>
    %c56_i32 = arith.constant 56 : i32
    %60 = vector.broadcast %c56_i32 : i32 to vector<128x1xi32>
    %61 = arith.cmpi slt, %41, %60 : vector<128x1xi32>
    %c1_i32_22 = arith.constant 1 : i32
    %62 = vector.broadcast %c1_i32_22 : i32 to vector<128x1xi32>
    %63 = arith.cmpi sge, %57, %62 : vector<128x1xi32>
    %c6_i32 = arith.constant 6 : i32
    %64 = vector.broadcast %c6_i32 : i32 to vector<128x1xi32>
    %65 = arith.cmpi sle, %57, %64 : vector<128x1xi32>
    %c0_23 = arith.constant 0 : index
    %c0_24 = arith.constant 0 : index
    %66 = vector.load %arg6[%c0_23, %c0_24] : memref<9x128xf32, #tpu.memory_space<vmem>>, vector<9x128xf32>
    %c1_i32_25 = arith.constant 1 : i32
    %67 = tpu.dynamic_rotate %24 by %c1_i32_25 dim 0 : vector<128x128xf32>, i32 -> vector<128x128xf32>
    %cst_26 = arith.constant 0.000000e+00 : f32
    %68 = vector.shape_cast %63 : vector<128x1xi1> to vector<128x1xi1>
    %69 = vector.broadcast %68 : vector<128x1xi1> to vector<128x128xi1>
    %70 = vector.broadcast %cst_26 : f32 to vector<128x128xf32>
    %71 = arith.select %69, %67, %70 : vector<128x128xi1>, vector<128x128xf32>
    %c127_i32 = arith.constant 127 : i32
    %72 = tpu.dynamic_rotate %24 by %c127_i32 dim 0 : vector<128x128xf32>, i32 -> vector<128x128xf32>
    %cst_27 = arith.constant 0.000000e+00 : f32
    %73 = vector.shape_cast %65 : vector<128x1xi1> to vector<128x1xi1>
    %74 = vector.broadcast %73 : vector<128x1xi1> to vector<128x128xi1>
    %75 = vector.broadcast %cst_27 : f32 to vector<128x128xf32>
    %76 = arith.select %74, %72, %75 : vector<128x128xi1>, vector<128x128xf32>
    %77 = vector.extract_strided_slice %66 {offsets = [3, 0], sizes = [1, 128], strides = [1, 1]} : vector<9x128xf32> to vector<1x128xf32>
    %78 = vector.broadcast %77 : vector<1x128xf32> to vector<128x128xf32>
    %79 = arith.mulf %71, %78 : vector<128x128xf32>
    %80 = vector.extract_strided_slice %66 {offsets = [4, 0], sizes = [1, 128], strides = [1, 1]} : vector<9x128xf32> to vector<1x128xf32>
    %81 = vector.broadcast %80 : vector<1x128xf32> to vector<128x128xf32>
    %82 = arith.mulf %24, %81 : vector<128x128xf32>
    %83 = arith.addf %79, %82 : vector<128x128xf32>
    %84 = vector.extract_strided_slice %66 {offsets = [5, 0], sizes = [1, 128], strides = [1, 1]} : vector<9x128xf32> to vector<1x128xf32>
    %85 = vector.broadcast %84 : vector<1x128xf32> to vector<128x128xf32>
    %86 = arith.mulf %76, %85 : vector<128x128xf32>
    %87 = arith.addf %83, %86 : vector<128x128xf32>
    %c8_i32_28 = arith.constant 8 : i32
    %88 = tpu.dynamic_rotate %71 by %c8_i32_28 dim 0 : vector<128x128xf32>, i32 -> vector<128x128xf32>
    %c8_i32_29 = arith.constant 8 : i32
    %89 = tpu.dynamic_rotate %24 by %c8_i32_29 dim 0 : vector<128x128xf32>, i32 -> vector<128x128xf32>
    %c8_i32_30 = arith.constant 8 : i32
    %90 = tpu.dynamic_rotate %76 by %c8_i32_30 dim 0 : vector<128x128xf32>, i32 -> vector<128x128xf32>
    %91 = vector.extract_strided_slice %66 {offsets = [0, 0], sizes = [1, 128], strides = [1, 1]} : vector<9x128xf32> to vector<1x128xf32>
    %92 = vector.broadcast %91 : vector<1x128xf32> to vector<128x128xf32>
    %93 = arith.mulf %88, %92 : vector<128x128xf32>
    %94 = vector.extract_strided_slice %66 {offsets = [1, 0], sizes = [1, 128], strides = [1, 1]} : vector<9x128xf32> to vector<1x128xf32>
    %95 = vector.broadcast %94 : vector<1x128xf32> to vector<128x128xf32>
    %96 = arith.mulf %89, %95 : vector<128x128xf32>
    %97 = arith.addf %93, %96 : vector<128x128xf32>
    %98 = vector.extract_strided_slice %66 {offsets = [2, 0], sizes = [1, 128], strides = [1, 1]} : vector<9x128xf32> to vector<1x128xf32>
    %99 = vector.broadcast %98 : vector<1x128xf32> to vector<128x128xf32>
    %100 = arith.mulf %90, %99 : vector<128x128xf32>
    %101 = arith.addf %97, %100 : vector<128x128xf32>
    %c120_i32 = arith.constant 120 : i32
    %102 = tpu.dynamic_rotate %71 by %c120_i32 dim 0 : vector<128x128xf32>, i32 -> vector<128x128xf32>
    %c120_i32_31 = arith.constant 120 : i32
    %103 = tpu.dynamic_rotate %24 by %c120_i32_31 dim 0 : vector<128x128xf32>, i32 -> vector<128x128xf32>
    %c120_i32_32 = arith.constant 120 : i32
    %104 = tpu.dynamic_rotate %76 by %c120_i32_32 dim 0 : vector<128x128xf32>, i32 -> vector<128x128xf32>
    %105 = vector.extract_strided_slice %66 {offsets = [6, 0], sizes = [1, 128], strides = [1, 1]} : vector<9x128xf32> to vector<1x128xf32>
    %106 = vector.broadcast %105 : vector<1x128xf32> to vector<128x128xf32>
    %107 = arith.mulf %102, %106 : vector<128x128xf32>
    %108 = vector.extract_strided_slice %66 {offsets = [7, 0], sizes = [1, 128], strides = [1, 1]} : vector<9x128xf32> to vector<1x128xf32>
    %109 = vector.broadcast %108 : vector<1x128xf32> to vector<128x128xf32>
    %110 = arith.mulf %103, %109 : vector<128x128xf32>
    %111 = arith.addf %107, %110 : vector<128x128xf32>
    %112 = vector.extract_strided_slice %66 {offsets = [8, 0], sizes = [1, 128], strides = [1, 1]} : vector<9x128xf32> to vector<1x128xf32>
    %113 = vector.broadcast %112 : vector<1x128xf32> to vector<128x128xf32>
    %114 = arith.mulf %104, %113 : vector<128x128xf32>
    %115 = arith.addf %111, %114 : vector<128x128xf32>
    %cst_33 = arith.constant 0.000000e+00 : f32
    %116 = vector.shape_cast %59 : vector<128x1xi1> to vector<128x1xi1>
    %117 = vector.broadcast %116 : vector<128x1xi1> to vector<128x128xi1>
    %118 = vector.broadcast %cst_33 : f32 to vector<128x128xf32>
    %119 = arith.select %117, %101, %118 : vector<128x128xi1>, vector<128x128xf32>
    %120 = arith.addf %87, %119 : vector<128x128xf32>
    %cst_34 = arith.constant 0.000000e+00 : f32
    %121 = vector.shape_cast %61 : vector<128x1xi1> to vector<128x1xi1>
    %122 = vector.broadcast %121 : vector<128x1xi1> to vector<128x128xi1>
    %123 = vector.broadcast %cst_34 : f32 to vector<128x128xf32>
    %124 = arith.select %122, %115, %123 : vector<128x128xi1>, vector<128x128xf32>
    %125 = arith.addf %120, %124 : vector<128x128xf32>
    %c0_35 = arith.constant 0 : index
    %c0_36 = arith.constant 0 : index
    %126 = vector.load %arg7[%c0_35, %c0_36] : memref<1x128xf32, #tpu.memory_space<vmem>>, vector<1x128xf32>
    %127 = vector.broadcast %126 : vector<1x128xf32> to vector<128x128xf32>
    %128 = arith.addf %125, %127 : vector<128x128xf32>
    %129 = arith.mulf %128, %128 : vector<128x128xf32>
    %130 = arith.mulf %128, %129 : vector<128x128xf32>
    %cst_37 = arith.constant 4.471500e-02 : f32
    %131 = vector.broadcast %cst_37 : f32 to vector<128x128xf32>
    %132 = arith.mulf %131, %130 : vector<128x128xf32>
    %133 = arith.addf %128, %132 : vector<128x128xf32>
    %cst_38 = arith.constant 0.797884583 : f32
    %134 = vector.broadcast %cst_38 : f32 to vector<128x128xf32>
    %135 = arith.mulf %134, %133 : vector<128x128xf32>
    %136 = math.tanh %135 : vector<128x128xf32>
    %cst_39 = arith.constant 1.000000e+00 : f32
    %137 = vector.broadcast %cst_39 : f32 to vector<128x128xf32>
    %138 = arith.addf %137, %136 : vector<128x128xf32>
    %cst_40 = arith.constant 5.000000e-01 : f32
    %139 = vector.broadcast %cst_40 : f32 to vector<128x128xf32>
    %140 = arith.mulf %139, %138 : vector<128x128xf32>
    %141 = arith.mulf %128, %140 : vector<128x128xf32>
    %c0_41 = arith.constant 0 : index
    %c0_42 = arith.constant 0 : index
    %142 = vector.load %arg8[%c0_41, %c0_42] : memref<1x128xf32, #tpu.memory_space<vmem>>, vector<1x128xf32>
    %143 = vector.broadcast %142 : vector<1x128xf32> to vector<128x128xf32>
    %144 = arith.mulf %141, %143 : vector<128x128xf32>
    %c0_43 = arith.constant 0 : index
    %c0_44 = arith.constant 0 : index
    %145 = vector.load %arg9[%c0_43, %c0_44] : memref<1x128xf32, #tpu.memory_space<vmem>>, vector<1x128xf32>
    %146 = vector.broadcast %145 : vector<1x128xf32> to vector<128x128xf32>
    %147 = arith.addf %144, %146 : vector<128x128xf32>
    %148 = arith.truncf %147 : vector<128x128xf32> to vector<128x128xbf16>
    %c0_45 = arith.constant 0 : index
    %c0_46 = arith.constant 0 : index
    %149 = vector.load %arg10[%c0_45, %c0_46] : memref<128x128xbf16, #tpu.memory_space<vmem>>, vector<128x128xbf16>
    %cst_47 = arith.constant dense<0.000000e+00> : vector<128x128xf32>
    %150 = tpu.matmul %148, %149, %cst_47 {dimension_numbers = #tpu.dot_dimension_numbers<[1], [0], [0], [1], [0, 0, 1, 1], [], []>} : vector<128x128xbf16>, vector<128x128xbf16>, vector<128x128xf32> -> vector<128x128xf32>
    %c0_48 = arith.constant 0 : index
    %c0_49 = arith.constant 0 : index
    %151 = vector.load %arg11[%c0_48, %c0_49] : memref<1x128xf32, #tpu.memory_space<vmem>>, vector<1x128xf32>
    %152 = vector.broadcast %151 : vector<1x128xf32> to vector<128x128xf32>
    %153 = arith.addf %150, %152 : vector<128x128xf32>
    %c0_50 = arith.constant 0 : index
    %c0_51 = arith.constant 0 : index
    %154 = vector.load %arg12[%c0_50, %c0_51] : memref<128x128xf32, #tpu.memory_space<vmem>>, vector<128x128xf32>
    tpu.vector_store %arg12[%c0_50, %c0_51], %153 {strides = array<i32>} : memref<128x128xf32, #tpu.memory_space<vmem>>, vector<128x128xf32>,
    return
  }
  func.func @transform_0(%arg0: i32) -> (i32, i32) {
    %c0_i32 = arith.constant 0 : i32
    %c0_i32_0 = arith.constant 0 : i32
    return %arg0, %c0_i32 : i32, i32
  }
  func.func @transform_1(%arg0: i32) -> (i32, i32) {
    %c0_i32 = arith.constant 0 : i32
    %c0_i32_0 = arith.constant 0 : i32
    %c0_i32_1 = arith.constant 0 : i32
    return %c0_i32, %c0_i32_0 : i32, i32
  }
  func.func @transform_2(%arg0: i32) -> (i32, i32) {
    %c0_i32 = arith.constant 0 : i32
    %c0_i32_0 = arith.constant 0 : i32
    %c0_i32_1 = arith.constant 0 : i32
    return %c0_i32, %c0_i32_0 : i32, i32
  }
  func.func @transform_3(%arg0: i32) -> (i32, i32) {
    %c0_i32 = arith.constant 0 : i32
    %c0_i32_0 = arith.constant 0 : i32
    %c0_i32_1 = arith.constant 0 : i32
    return %c0_i32, %c0_i32_0 : i32, i32
  }
  func.func @transform_4(%arg0: i32) -> (i32, i32) {
    %c0_i32 = arith.constant 0 : i32
    %c0_i32_0 = arith.constant 0 : i32
    %c0_i32_1 = arith.constant 0 : i32
    return %c0_i32, %c0_i32_0 : i32, i32
  }
  func.func @transform_5(%arg0: i32) -> (i32, i32) {
    %c0_i32 = arith.constant 0 : i32
    %c0_i32_0 = arith.constant 0 : i32
    %c0_i32_1 = arith.constant 0 : i32
    return %c0_i32, %c0_i32_0 : i32, i32
  }
  func.func @transform_6(%arg0: i32) -> (i32, i32) {
    %c0_i32 = arith.constant 0 : i32
    %c0_i32_0 = arith.constant 0 : i32
    %c0_i32_1 = arith.constant 0 : i32
    return %c0_i32, %c0_i32_0 : i32, i32
  }
  func.func @transform_7(%arg0: i32) -> (i32, i32) {
    %c0_i32 = arith.constant 0 : i32
    %c0_i32_0 = arith.constant 0 : i32
    %c0_i32_1 = arith.constant 0 : i32
    return %c0_i32, %c0_i32_0 : i32, i32
  }
  func.func @transform_8(%arg0: i32) -> (i32, i32) {
    %c0_i32 = arith.constant 0 : i32
    %c0_i32_0 = arith.constant 0 : i32
    %c0_i32_1 = arith.constant 0 : i32
    return %c0_i32, %c0_i32_0 : i32, i32
  }
  func.func @transform_9(%arg0: i32) -> (i32, i32) {
    %c0_i32 = arith.constant 0 : i32
    %c0_i32_0 = arith.constant 0 : i32
    %c0_i32_1 = arith.constant 0 : i32
    return %c0_i32, %c0_i32_0 : i32, i32
  }
  func.func @transform_10(%arg0: i32) -> (i32, i32) {
    %c0_i32 = arith.constant 0 : i32
    %c0_i32_0 = arith.constant 0 : i32
    %c0_i32_1 = arith.constant 0 : i32
    return %c0_i32, %c0_i32_0 : i32, i32
  }
  func.func @transform_11(%arg0: i32) -> (i32, i32) {
    %c0_i32 = arith.constant 0 : i32
    %c0_i32_0 = arith.constant 0 : i32
    return %arg0, %c0_i32 : i32, i32
  }
}

</mosaic_0001>

<bundles_post_ra>
// kernel: conv_mlp_forward.1
= control target key start
LH: loop header
LB: loop body
LE: loop exit
PB: predicated region body
PF: predicated region fallthrough
CT: control target
= control target key end

     0   :  { %v403_v47 = vlaneseq  ;;  %s3284_s1 = inlined_call_operand.vmem [shape: bf16[128,128], index: 1, kind: input, shape index: {}]   ;;  %s3285_s2 = inlined_call_operand.vmem [shape: f32[1,128], index: 2, kind: input, shape index: {}]   ;;  %s3286_s3 = inlined_call_operand.vmem [shape: f32[1,128], index: 3, kind: input, shape index: {}]   ;;  %s3287_s4 = inlined_call_operand.vmem [shape: f32[1,128], index: 4, kind: input, shape index: {}]   ;;  %s3288_s5 = inlined_call_operand.vmem [shape: f32[9,128], index: 5, kind: input, shape index: {}]   ;;  %s3289_s0 = inlined_call_operand.vmem [shape: bf16[128,128], index: 0, kind: input, shape index: {}]   ;;  %s3290_s6 = inlined_call_operand.vmem [shape: f32[1,128], index: 6, kind: input, shape index: {}]   ;;  %s3291_s7 = inlined_call_operand.vmem [shape: f32[1,128], index: 7, kind: input, shape index: {}]   ;;  %s3292_s8 = inlined_call_operand.vmem [shape: f32[1,128], index: 8, kind: input, shape index: {}]   ;;  %s3293_s9 = inlined_call_operand.vmem [shape: bf16[128,128], index: 9, kind: input, shape index: {}]   ;;  %s3294_s10 = inlined_call_operand.vmem [shape: f32[1,128], index: 10, kind: input, shape index: {}]   ;;  %s3295_s11 = inlined_call_operand.vmem [shape: f32[128,128], index: 11, kind: output, shape index: {}]  }
   0x1   :  { %v1869_v0 = vld [vmem:[%s3284_s1 + $0x38] sm:$0xff]  ;;  %v1868_v1 = vld [vmem:[%s3284_s1 + $0x30] sm:$0xff]  ;;  %v1867_v2 = vld [vmem:[%s3284_s1 + $0x28] sm:$0xff] }
   0x2   :  { %170 = vmatpush.bf16.msra.mxu0 %v1869_v0  ;;  %1878 = vmatpush.bf16.msra.mxu2 %v1869_v0  ;;  %v1866_v3 = vld [vmem:[%s3284_s1 + $0x20] sm:$0xff]  ;;  %v1865_v4 = vld [vmem:[%s3284_s1 + $0x18] sm:$0xff]  ;;  %v1864_v5 = vld [vmem:[%s3284_s1 + $0x10] sm:$0xff]  ;;  %v2121_v59 = vshrl.u32 %v403_v47, 7 }
   0x3   :  { %v1863_v6 = vld [vmem:[%s3284_s1 + $0x8] sm:$0xff]  ;;  %v1862_v7 = vld [vmem:[%s3284_s1] sm:$0xff]  ;;  %v1856_v12 = vld [vmem:[%s3289_s0 + $0x10] sm:$0xff] }
   0x4   :  { %v1854_v8 = vld [vmem:[%s3289_s0] sm:$0xff]  ;;  %v1855_v10 = vld [vmem:[%s3289_s0 + $0x8] sm:$0xff]  ;;  %v1860_v13 = vld [vmem:[%s3289_s0 + $0x30] sm:$0xff]  ;;  %vm886_vm0 = vcmp.lt.s32.totalorder %v2121_v59, 1  ;;  %vm967_vm2 = vcmp.lt.s32.totalorder %v2121_v59, 7 }
   0x5   :  { %v1858_v9 = vld [vmem:[%s3289_s0 + $0x20] sm:$0xff]  ;;  %v1859_v11 = vld [vmem:[%s3289_s0 + $0x28] sm:$0xff]  ;;  %v1857_v14 = vld [vmem:[%s3289_s0 + $0x18] sm:$0xff] }
   0x6   :  { %171 = vmatpush.bf16.msra.mxu0 %v1868_v1  ;;  %1879 = vmatpush.bf16.msra.mxu2 %v1868_v1  ;;  %v1861_v15 = vld [vmem:[%s3289_s0 + $0x38] sm:$0xff]  ;;  %v2078_v16 = vld [vmem:[%s3285_s2] ss:$0 sm:$0xff] }
   0x7   :  { %v2110_v51 = vld [vmem:[%s3286_s3] ss:$0 sm:$0xff] }
   0x8   :  { %v2119_v57 = vld [vmem:[%s3287_s4] ss:$0 sm:$0xff] }
   0xa   :  { %172 = vmatpush.bf16.msra.mxu0 %v1867_v2  ;;  %1880 = vmatpush.bf16.msra.mxu2 %v1867_v2  ;;  %v2133_v2 = vld [vmem:[%s3288_s5] sm:$0xff] }
   0xe   :  { %173 = vmatpush.bf16.msra.mxu0 %v1866_v3  ;;  %1881 = vmatpush.bf16.msra.mxu2 %v1866_v3 }
  0x12   :  { %174 = vmatpush.bf16.msra.mxu0 %v1865_v4  ;;  %1882 = vmatpush.bf16.msra.mxu2 %v1865_v4  ;;  %v2136_v4 = vadd.s32 64, %v2121_v59 }
  0x16   :  { %175 = vmatpush.bf16.msra.mxu0 %v1864_v5  ;;  %1883 = vmatpush.bf16.msra.mxu2 %v1864_v5  ;;  %v2139_v5 = vadd.s32 72, %v2121_v59 }
  0x1a   :  { %176 = vmatpush.bf16.msra.mxu0 %v1863_v6  ;;  %1884 = vmatpush.bf16.msra.mxu2 %v1863_v6 }
  0x1e   :  { %177 = vmatpush.bf16.msra.mxu0 %v1862_v7  ;;  %1885 = vmatpush.bf16.msra.mxu2 %v1862_v7 }
  0x21   :  { %178 = vmatmul.bf16.vlgmr.msra.gmra.mxu0 %v1854_v8  ;;  %198 = vmatmul.bf16.vlgmr.msra.gmra.mxu2 %v1858_v9 }
  0x31   :  { %183 = vmatmul.bf16.gmra.mxu0 %v1855_v10  ;;  %203 = vmatmul.bf16.gmra.mxu2 %v1859_v11 }
  0x41   :  { %188 = vmatmul.bf16.gmra.mxu0 %v1856_v12  ;;  %208 = vmatmul.bf16.gmra.mxu2 %v1860_v13  ;;  %v2148_v13 = vadd.s32 80, %v2121_v59 }
  0x51   :  { %193 = vmatmul.bf16.gmra.mxu0 %v1857_v14  ;;  %213 = vmatmul.bf16.gmra.mxu2 %v1861_v15  ;;  %v2151_v14 = vperm.slane %v2133_v2, 4 }
  0x9e   :  { %v179_v17 = vpop.f32.mrf.mxu0 }
  0x9f   :  { %v180_v18 = vadd.f32 %v2078_v16, %v179_v17 }
  0xa1   :  { %v219_v19 = vmul.f32 %v180_v18, %v180_v18 }
  0xa3   :  { %v235_v20 = vmul.f32 %v219_v19, %v180_v18  ;;  %v2158_v19 = vperm.slane %v2133_v2, 1 }
  0xa4   :  { %v199_v21 = vpop.f32.mrf.mxu2 }
  0xa5   :  { %v251_v22 = vmul.f32 0.044715, %v235_v20  ;;  %v2082_v23 = vadd.f32 %v2078_v16, %v199_v21  ;;  %3306 = vst [vmem:[#allocation2_spill] sm:$0xff] %v2158_v19  ;;  %v2161_v21 = vperm.slane %v2133_v2, 7 }
  0xa6   :  { %v181_v24 = vpop.f32.mrf.mxu0 }
  0xa7   :  { %v267_v25 = vadd.f32 %v251_v22, %v180_v18  ;;  %v227_v26 = vmul.f32 %v2082_v23, %v2082_v23  ;;  %v2087_v27 = vadd.f32 %v2078_v16, %v181_v24  ;;  %v3299_v22 = vand.u32 7, %v2136_v4 }
  0xa9   :  { %v283_v28 = vmul.f32 0.7978846, %v267_v25  ;;  %v243_v29 = vmul.f32 %v227_v26, %v2082_v23  ;;  %v220_v30 = vmul.f32 %v2087_v27, %v2087_v27  ;;  %vm2346_vm4 = vcmp.le.s32.totalorder %v3299_v22, 6 }
  0xab   :  { %1902 = vtanh.f32 %v283_v28  ;;  %v259_v31 = vmul.f32 0.044715, %v243_v29  ;;  %v236_v32 = vmul.f32 %v220_v30, %v2087_v27 }
  0xac   :  { %v201_v33 = vpop.f32.mrf.mxu2 }
  0xad   :  { %v275_v34 = vadd.f32 %v259_v31, %v2082_v23  ;;  %v252_v35 = vmul.f32 0.044715, %v236_v32  ;;  %v2095_v36 = vadd.f32 %v2078_v16, %v201_v33  ;;  %v679_v32 = vand.u32 7, %v2139_v5 }
  0xae   :  { %v184_v37 = vpop.f32.mrf.mxu0  ;;  %v686_v33 = vand.u32 7, %v2148_v13 }
  0xaf   :  { %v291_v38 = vmul.f32 0.7978846, %v275_v34  ;;  %v268_v39 = vadd.f32 %v252_v35, %v2087_v27  ;;  %v228_v40 = vmul.f32 %v2095_v36, %v2095_v36  ;;  %v2101_v41 = vadd.f32 %v2078_v16, %v184_v37 }
  0xb0   :  { %vm2234_vm1 = vcmp.ge.s32.totalorder %v679_v32, 1  ;;  %vm2300_vm3 = vcmp.ge.s32.totalorder %v686_v33, 1  ;;  %vm2366_vm5 = vcmp.le.s32.totalorder %v679_v32, 6  ;;  %vm2385_vm6 = vcmp.le.s32.totalorder %v686_v33, 6 }
  0xb1   :  { %v1903_v42 = vpop.eup %1902  ;;  %1904 = vtanh.f32 %v291_v38  ;;  %v284_v43 = vmul.f32 0.7978846, %v268_v39  ;;  %v244_v44 = vmul.f32 %v228_v40, %v2095_v36  ;;  %v221_v45 = vmul.f32 %v2101_v41, %v2101_v41 }
  0xb2   :  { %v315_v46 = vadd.f32 1.0, %v1903_v42 }
  0xb3   :  { %1906 = vtanh.f32 %v284_v43  ;;  %v260_v48 = vmul.f32 0.044715, %v244_v44  ;;  %v237_v49 = vmul.f32 %v221_v45, %v2101_v41 }
  0xb4   :  { %v331_v50 = vmul.f32 0.5, %v315_v46  ;;  %v204_v52 = vpop.f32.mrf.mxu2 }
  0xb5   :  { %v276_v53 = vadd.f32 %v260_v48, %v2095_v36  ;;  %v253_v54 = vmul.f32 0.044715, %v237_v49  ;;  %v2114_v55 = vadd.f32 %v2078_v16, %v204_v52 }
  0xb6   :  { %v347_v56 = vmul.f32 %v331_v50, %v180_v18  ;;  %v186_v58 = vpop.f32.mrf.mxu0  ;;  %v2155_v18 = vperm.slane %v2133_v2, 3 }
  0xb7   :  { %v1905_v60 = vpop.eup %1904  ;;  %v292_v61 = vmul.f32 0.7978846, %v276_v53  ;;  %v269_v62 = vadd.f32 %v253_v54, %v2101_v41  ;;  %v229_v63 = vmul.f32 %v2114_v55, %v2114_v55  ;;  %v2127_v0 = vadd.f32 %v2078_v16, %v186_v58 }
  0xb8   :  { %v367_v1 = vmul.f32 %v2110_v51, %v347_v56  ;;  %v323_v3 = vadd.f32 1.0, %v1905_v60  ;;  %v2198_v56 = vperm.slane %v2133_v2, 5 }
  0xb9   :  { %v1907_v6 = vpop.eup %1906  ;;  %1908 = vtanh.f32 %v292_v61  ;;  %v285_v7 = vmul.f32 0.7978846, %v269_v62  ;;  %v245_v8 = vmul.f32 %v229_v63, %v2114_v55  ;;  %v222_v9 = vmul.f32 %v2127_v0, %v2127_v0 }
  0xba   :  { %v2145_v10 = vadd.f32 %v2119_v57, %v367_v1  ;;  %v339_v11 = vmul.f32 0.5, %v323_v3  ;;  %v316_v12 = vadd.f32 1.0, %v1907_v6 }
  0xbb   :  { %1910 = vtanh.f32 %v285_v7  ;;  %v261_v15 = vmul.f32 0.044715, %v245_v8  ;;  %v238_v17 = vmul.f32 %v222_v9, %v2127_v0 }
  0xbc   :  { %v206_v20 = vpop.f32.mrf.mxu2  ;;  %v355_v24 = vmul.f32 %v339_v11, %v2082_v23  ;;  %v332_v25 = vmul.f32 0.5, %v316_v12  ;;  %v2190_v52 = vmul.f32 %v2151_v14, %v2145_v10  ;;  %v2194_v53 = vmul.f32 %v2158_v19, %v2145_v10 }
  0xbd   :  { %v277_v26 = vadd.f32 %v261_v15, %v2114_v55  ;;  %v254_v28 = vmul.f32 0.044715, %v238_v17  ;;  %v2168_v30 = vadd.f32 %v2078_v16, %v206_v20 }
  0xbe   :  { %v189_v31 = vpop.f32.mrf.mxu0  ;;  %v375_v35 = vmul.f32 %v2110_v51, %v355_v24  ;;  %v348_v37 = vmul.f32 %v332_v25, %v2087_v27 }
  0xbf   :  { %v1909_v34 = vpop.eup %1908  ;;  %v293_v23 = vmul.f32 0.7978846, %v277_v26  ;;  %v270_v38 = vadd.f32 %v254_v28, %v2127_v0  ;;  %v230_v42 = vmul.f32 %v2168_v30, %v2168_v30  ;;  %v2179_v43 = vadd.f32 %v2078_v16, %v189_v31 }
  0xc0   :  { %v324_v40 = vadd.f32 1.0, %v1909_v34  ;;  %v2182_v45 = vadd.f32 %v2119_v57, %v375_v35  ;;  %v368_v46 = vmul.f32 %v2110_v51, %v348_v37 }
  0xc1   :  { %v1911_v44 = vpop.eup %1910  ;;  %1912 = vtanh.f32 %v293_v23  ;;  %v286_v27 = vmul.f32 0.7978846, %v270_v38  ;;  %v246_v49 = vmul.f32 %v230_v42, %v2168_v30  ;;  %v223_v50 = vmul.f32 %v2179_v43, %v2179_v43 }
  0xc2   :  { %3307 = vst [vmem:[#allocation3_spill] sm:$0xff] %v2182_v45  ;;  %v340_v47 = vmul.f32 0.5, %v324_v40  ;;  %v317_v48 = vadd.f32 1.0, %v1911_v44  ;;  %v3296_v54 = vrot.slane %v2182_v45, 7  ;;  %v2201_v58 = vadd.f32 %v2119_v57, %v368_v46 }
  0xc3   :  { %1914 = vtanh.f32 %v286_v27  ;;  %v3297_v63 = vrot.slane %v2182_v45, 1  ;;  %v262_v1 = vmul.f32 0.044715, %v246_v49  ;;  %v239_v3 = vmul.f32 %v223_v50, %v2179_v43 }
  0xc4   :  { %v356_v60 = vmul.f32 %v340_v47, %v2095_v36  ;;  %v333_v61 = vmul.f32 0.5, %v317_v48  ;;  %v209_v62 = vpop.f32.mrf.mxu2  ;;  %v2211_v7 = vmul.f32 %v2151_v14, %v2182_v45  ;;  %v2215_v8 = vmul.f32 %v2158_v19, %v2182_v45 }
  0xc5   :  { %v2207_v6 = vadd.f32 %v2078_v16, %v209_v62  ;;  %v278_v20 = vadd.f32 %v262_v1, %v2168_v30  ;;  %v255_v24 = vmul.f32 0.044715, %v239_v3  ;;  %v2225_v25 = vmul.f32 %v2151_v14, %v2201_v58 }
  0xc6   :  { %v191_v11 = vpop.f32.mrf.mxu0  ;;  %v376_v15 = vmul.f32 %v2110_v51, %v356_v60  ;;  %v349_v17 = vmul.f32 %v333_v61, %v2101_v41  ;;  %v2245_v40 = vmul.f32 %v2158_v19, %v2201_v58  ;;  %v2254_v48 = vperm.slane %v2133_v2, 0 }
  0xc7   :  { %v1913_v12 = vpop.eup %1912  ;;  %v231_v28 = vmul.f32 %v2207_v6, %v2207_v6  ;;  %v2230_v31 = vadd.f32 %v2078_v16, %v191_v11  ;;  %v294_v37 = vmul.f32 0.7978846, %v278_v20  ;;  %v271_v23 = vadd.f32 %v255_v24, %v2179_v43 }
  0xc8   :  { %v325_v26 = vadd.f32 1.0, %v1913_v12  ;;  %v2239_v34 = vadd.f32 %v2119_v57, %v376_v15  ;;  %v369_v35 = vmul.f32 %v2110_v51, %v349_v17  ;;  %3310 = vst [vmem:[#allocation4_spill] sm:$0xff] %v2245_v40  ;;  %v2257_v49 = vperm.slane %v2133_v2, 2 }
  0xc9   :  { %v1915_v38 = vpop.eup %1914  ;;  %v247_v44 = vmul.f32 %v231_v28, %v2207_v6  ;;  %v224_v46 = vmul.f32 %v2230_v31, %v2230_v31  ;;  %1916 = vtanh.f32 %v294_v37  ;;  %v287_v1 = vmul.f32 0.7978846, %v271_v23 }
  0xca   :  { %v341_v42 = vmul.f32 0.5, %v325_v26  ;;  %v879_v27 = vrot.slane %v2239_v34, 7  ;;  %v3298_v47 = vrot.slane %v2239_v34, 1  ;;  %v2260_v50 = vadd.f32 %v2119_v57, %v369_v35 }
  0xcb   :  { %v318_v61 = vadd.f32 1.0, %v1915_v38  ;;  %v263_v3 = vmul.f32 0.044715, %v247_v44  ;;  %v240_v11 = vmul.f32 %v224_v46, %v2230_v31  ;;  %v2269_v15 = vmul.f32 %v2151_v14, %v2239_v34 }
  0xcc   :  { %v357_v60 = vmul.f32 %v341_v42, %v2114_v55  ;;  %v211_v62 = vpop.f32.mrf.mxu2  ;;  %v2273_v17 = vmul.f32 %v2158_v19, %v2239_v34  ;;  %1918 = vtanh.f32 %v287_v1  ;;  %v893_v42 = vsel %vm886_vm0, %v3296_v54, %v879_v27 }
  0xcd   :  { %v2265_v12 = vadd.f32 %v2078_v16, %v211_v62  ;;  %v334_v28 = vmul.f32 0.5, %v318_v61  ;;  %v279_v35 = vadd.f32 %v263_v3, %v2207_v6  ;;  %v256_v37 = vmul.f32 0.044715, %v240_v11 }
  0xce   :  { %v194_v24 = vpop.f32.mrf.mxu0  ;;  %v377_v26 = vmul.f32 %v2110_v51, %v357_v60  ;;  %v2292_v44 = vmul.f32 %v2151_v14, %v2260_v50  ;;  %v2306_v3 = vmul.f32 %v2158_v19, %v2260_v50 }
  0xcf   :  { %v232_v23 = vmul.f32 %v2265_v12, %v2265_v12  ;;  %v2282_v38 = vadd.f32 %v2078_v16, %v194_v24  ;;  %v350_v60 = vmul.f32 %v334_v28, %v2127_v0  ;;  %v295_v61 = vmul.f32 0.7978846, %v279_v35  ;;  %v1917_v1 = vpop.eup %1916 }
  0xd0   :  { %3311 = vst [vmem:[#allocation5_spill] sm:$0xff] %v2292_v44  ;;  %v2295_v46 = vadd.f32 %v2119_v57, %v377_v26  ;;  %v272_v11 = vadd.f32 %v256_v37, %v2230_v31  ;;  %v2316_v35 = vsel %vm2234_vm1, %v893_v42, 0.0  ;;  %v2324_v37 = vsel %vm967_vm2, %v3297_v63, %v3298_v47 }
  0xd1   :  { %3314 = vst [vmem:[#allocation6_spill] sm:$0xff] %v2306_v3  ;;  %v248_v24 = vmul.f32 %v232_v23, %v2265_v12  ;;  %v225_v26 = vmul.f32 %v2282_v38, %v2282_v38  ;;  %v370_v23 = vmul.f32 %v2110_v51, %v350_v60  ;;  %v326_v54 = vadd.f32 1.0, %v1917_v1 }
  0xd2   :  { %v3300_v0 = vrot.slane %v2295_v46, 7  ;;  %1920 = vtanh.f32 %v295_v61  ;;  %v288_v39 = vmul.f32 0.7978846, %v272_v11  ;;  %v1919_v20 = vpop.eup %1918  ;;  %v2329_v41 = vmul.f32 %v2151_v14, %v2295_v46 }
  0xd3   :  { %v264_v42 = vmul.f32 0.044715, %v248_v24  ;;  %v241_v29 = vmul.f32 %v225_v26, %v2282_v38  ;;  %v2336_v63 = vadd.f32 %v2119_v57, %v370_v23  ;;  %v342_v55 = vmul.f32 0.5, %v326_v54 }
  0xd4   :  { %v214_v9 = vpop.f32.mrf.mxu2  ;;  %v319_v60 = vadd.f32 1.0, %v1919_v20  ;;  %1922 = vtanh.f32 %v288_v39  ;;  %v2352_v54 = vmul.f32 %v2158_v19, %v2295_v46  ;;  %v892_v20 = vsel %vm886_vm0, %v879_v27, %v3300_v0 }
  0xd5   :  { %v2333_v36 = vadd.f32 %v2078_v16, %v214_v9  ;;  %v280_v1 = vadd.f32 %v264_v42, %v2265_v12  ;;  %v257_v11 = vmul.f32 0.044715, %v241_v29  ;;  %v358_v26 = vmul.f32 %v342_v55, %v2168_v30  ;;  %v1876_v9 = vld [vmem:[%s3293_s9 + $0x30] sm:$0xff] }
  0xd6   :  { %v196_v61 = vpop.f32.mrf.mxu0  ;;  %v335_v23 = vmul.f32 0.5, %v319_v60  ;;  %v2372_v29 = vmul.f32 %v2151_v14, %v2336_v63  ;;  %v2376_v27 = vmul.f32 %v2158_v19, %v2336_v63  ;;  %v2392_v3 = vsel %vm2300_vm3, %v892_v20, 0.0 }
  0xd7   :  { %v233_v47 = vmul.f32 %v2333_v36, %v2333_v36  ;;  %v2342_v24 = vadd.f32 %v2078_v16, %v196_v61  ;;  %v296_v42 = vmul.f32 0.7978846, %v280_v1  ;;  %v273_v61 = vadd.f32 %v257_v11, %v2282_v38 }
  0xd8   :  { %v1921_v39 = vpop.eup %1920  ;;  %3319 = vst [vmem:[#allocation7_spill] sm:$0xff] %v2372_v29  ;;  %v378_v5 = vmul.f32 %v2110_v51, %v358_v26  ;;  %v351_v32 = vmul.f32 %v335_v23, %v2179_v43  ;;  %v3357_v44 = vrot.slane %v2145_v10, 1 }
  0xd9   :  { %3320 = vst [vmem:[#allocation8_spill] sm:$0xff] %v2376_v27  ;;  %v249_v30 = vmul.f32 %v233_v47, %v2333_v36  ;;  %v226_v55 = vmul.f32 %v2342_v24, %v2342_v24  ;;  %v327_v60 = vadd.f32 1.0, %v1921_v39  ;;  %1924 = vtanh.f32 %v296_v42 }
  0xda   :  { %v1923_v11 = vpop.eup %1922  ;;  %v289_v0 = vmul.f32 0.7978846, %v273_v61  ;;  %v2395_v43 = vadd.f32 %v2119_v57, %v378_v5  ;;  %v371_v39 = vmul.f32 %v2110_v51, %v351_v32 }
  0xdb   :  { %v265_v28 = vmul.f32 0.044715, %v249_v30  ;;  %v242_v47 = vmul.f32 %v226_v55, %v2342_v24  ;;  %v343_v13 = vmul.f32 0.5, %v327_v60  ;;  %v320_v33 = vadd.f32 1.0, %v1923_v11 }
  0xdc   :  { %v216_v27 = vpop.f32.mrf.mxu2  ;;  %1926 = vtanh.f32 %v289_v0  ;;  %v3301_v62 = vrot.slane %v2395_v43, 1  ;;  %v2406_v20 = vmul.f32 %v2151_v14, %v2395_v43  ;;  %v3323_v30 = vrot.slane %v2295_v46, 1 }
  0xdd   :  { %v281_v26 = vadd.f32 %v265_v28, %v2333_v36  ;;  %v258_v23 = vmul.f32 0.044715, %v242_v47  ;;  %v2400_v42 = vadd.f32 %v2078_v16, %v216_v27  ;;  %v3324_v55 = vrot.slane %v2239_v34, 1 }
  0xde   :  { %v2415_v28 = vadd.f32 %v2119_v57, %v371_v39  ;;  %v359_v16 = vmul.f32 %v343_v13, %v2207_v6  ;;  %v336_v27 = vmul.f32 0.5, %v320_v33  ;;  %v2420_v60 = vmul.f32 %v2158_v19, %v2395_v43 }
  0xdf   :  { %v973_v0 = vsel %vm967_vm2, %v3324_v55, %v3323_v30  ;;  %v297_v5 = vmul.f32 0.7978846, %v281_v26  ;;  %v1925_v32 = vpop.eup %1924  ;;  %v274_v11 = vadd.f32 %v258_v23, %v2342_v24  ;;  %v234_v47 = vmul.f32 %v2400_v42, %v2400_v42  ;;  %v1877_v26 = vld [vmem:[%s3293_s9 + $0x38] sm:$0xff] }
  0xe0   :  { %3325 = vst [vmem:[#allocation9_spill] sm:$0xff] %v2420_v60  ;;  %v972_v39 = vsel %vm967_vm2, %v3323_v30, %v3301_v62  ;;  %v2435_v33 = vmul.f32 %v2151_v14, %v2415_v28  ;;  %v1024_v23 = vsel %vm2346_vm4, %v2324_v37, 0.0  ;;  %v379_v55 = vmul.f32 %v2110_v51, %v359_v16  ;;  %1886 = vmatpush.bf16.msra.mxu3 %v1877_v26 }
  0xe1   :  { %v352_v30 = vmul.f32 %v336_v27, %v2230_v31  ;;  %v328_v62 = vadd.f32 1.0, %v1925_v32  ;;  %1928 = vtanh.f32 %v297_v5  ;;  %v2447_v13 = vmul.f32 %v2158_v19, %v2415_v28  ;;  %1689 = vmatpush.bf16.msra.mxu1 %v1877_v26 }
  0xe2   :  { %3326 = vst [vmem:[#allocation10_spill] sm:$0xff] %v2435_v33  ;;  %v1927_v6 = vpop.eup %1926  ;;  %v290_v61 = vmul.f32 0.7978846, %v274_v11  ;;  %v250_v33 = vmul.f32 %v234_v47, %v2400_v42  ;;  %v2455_v37 = vsel %vm2366_vm5, %v973_v0, 0.0  ;;  %v2458_v31 = vadd.f32 %v2119_v57, %v379_v55 }
  0xe3   :  { %3327 = vst [vmem:[#allocation11_spill] sm:$0xff] %v2447_v13  ;;  %v372_v16 = vmul.f32 %v2110_v51, %v352_v30  ;;  %v344_v27 = vmul.f32 0.5, %v328_v62  ;;  %v321_v5 = vadd.f32 1.0, %v1927_v6  ;;  %v2463_v11 = vsel %vm2385_vm6, %v972_v39, 0.0 }
  0xe4   :  { %1930 = vtanh.f32 %v290_v61  ;;  %v266_v32 = vmul.f32 0.044715, %v250_v33  ;;  %v1042_v47 = vmul.f32 %v2155_v18, %v2316_v35  ;;  %v2471_v26 = vmul.f32 %v2151_v14, %v2458_v31  ;;  %1887 = vmatpush.bf16.msra.mxu3 %v1876_v9  ;;  %v1875_v33 = vld [vmem:[%s3293_s9 + $0x28] sm:$0xff] }
  0xe5   :  { %v2474_v62 = vmul.f32 %v2198_v56, %v1024_v23  ;;  %v2477_v61 = vadd.f32 %v2119_v57, %v372_v16  ;;  %v360_v1 = vmul.f32 %v344_v27, %v2265_v12  ;;  %v337_v39 = vmul.f32 0.5, %v321_v5  ;;  %1690 = vmatpush.bf16.msra.mxu1 %v1876_v9  ;;  %v2525_v27 = vld [vmem:[%s3288_s5 + $0x8] ss:$0 sm:$0xff] }
  0xe6   :  { %3328 = vst [vmem:[#allocation12_spill] sm:$0xff] %v2471_v26  ;;  %v282_v6 = vadd.f32 %v266_v32, %v2400_v42  ;;  %v2486_v30 = vmul.f32 %v2158_v19, %v2458_v31  ;;  %v1075_v0 = vadd.f32 %v2269_v15, %v1042_v47  ;;  %v1092_v16 = vmul.f32 %v2198_v56, %v2455_v37 }
  0xe7   :  { %v1929_v55 = vpop.eup %1928  ;;  %v2492_v12 = vmul.f32 %v2257_v49, %v1024_v23  ;;  %v2497_v5 = vmul.f32 %v2151_v14, %v2477_v61  ;;  %v2501_v9 = vmul.f32 %v2158_v19, %v2477_v61  ;;  %v2504_v32 = vperm.slane %v2133_v2, 6 }
  0xe8   :  { %3329 = vst [vmem:[#allocation13_spill] sm:$0xff] %v2486_v30  ;;  %v380_v15 = vmul.f32 %v2110_v51, %v360_v1  ;;  %v353_v47 = vmul.f32 %v337_v39, %v2282_v38  ;;  %v329_v22 = vadd.f32 1.0, %v1929_v55  ;;  %v298_v23 = vmul.f32 0.7978846, %v282_v6  ;;  %1888 = vmatpush.bf16.msra.mxu3 %v1875_v33 }
  0xe9   :  { %3330 = vst [vmem:[#allocation14_spill] sm:$0xff] %v2497_v5  ;;  %v1874_v5 = vld [vmem:[%s3293_s9 + $0x20] sm:$0xff]  ;;  %1691 = vmatpush.bf16.msra.mxu1 %v1875_v33  ;;  %v2512_v30 = vadd.f32 %v1092_v16, %v1075_v0  ;;  %v1207_v2 = vmul.f32 %v2504_v32, %v2316_v35  ;;  %v1208_v1 = vmul.f32 %v2504_v32, %v2392_v3  ;;  %v405_v16 = vadd.s32 8, %v2121_v59 }
  0xea   :  { %3331 = vst [vmem:[#allocation15_spill] sm:$0xff] %v2501_v9  ;;  %v1931_v13 = vpop.eup %1930  ;;  %v2519_v38 = vadd.f32 %v2119_v57, %v380_v15  ;;  %v373_v39 = vmul.f32 %v2110_v51, %v353_v47  ;;  %v345_v6 = vmul.f32 0.5, %v329_v22  ;;  %1932 = vtanh.f32 %v298_v23  ;;  %v1873_v15 = vld [vmem:[%s3293_s9 + $0x18] sm:$0xff] }
  0xeb   :  { %v322_v55 = vadd.f32 1.0, %v1931_v13  ;;  %v1224_v0 = vmul.f32 %v2161_v21, %v2239_v34  ;;  %v1225_v33 = vmul.f32 %v2161_v21, %v2295_v46  ;;  %v1257_v22 = vmul.f32 %v2525_v27, %v2455_v37 }
  0xec   :  { %v2536_v13 = vmul.f32 %v2151_v14, %v2519_v38  ;;  %v2542_v23 = vmul.f32 %v2158_v19, %v2519_v38  ;;  %v2545_v34 = vadd.f32 %v2119_v57, %v373_v39  ;;  %v361_v9 = vmul.f32 %v345_v6, %v2333_v36  ;;  %1889 = vmatpush.bf16.msra.mxu3 %v1874_v5 }
  0xed   :  { %v338_v60 = vmul.f32 0.5, %v322_v55  ;;  %1692 = vmatpush.bf16.msra.mxu1 %v1874_v5  ;;  %v3334_v47 = vand.u32 7, %v2136_v4  ;;  %v1240_v19 = vadd.f32 %v1224_v0, %v1207_v2  ;;  %v1258_v39 = vmul.f32 %v2525_v27, %v2463_v11  ;;  %v1872_v55 = vld [vmem:[%s3293_s9 + $0x10] sm:$0xff] }
  0xee   :  { %3332 = vst [vmem:[#allocation16_spill] sm:$0xff] %v2536_v13  ;;  %v3304_v36 = vand.u32 7, %v2121_v59  ;;  %v381_v5 = vmul.f32 %v2110_v51, %v361_v9  ;;  %v1241_v26 = vadd.f32 %v1225_v33, %v1208_v1  ;;  %v2566_v4 = vmul.f32 %v2151_v14, %v2545_v34 }
  0xef   :  { %3333 = vst [vmem:[#allocation17_spill] sm:$0xff] %v2542_v23  ;;  %vm2553_vm7 = vcmp.ge.s32.totalorder %v3334_v47, 1  ;;  %v406_v23 = vadd.s32 16, %v2121_v59  ;;  %v354_v2 = vmul.f32 %v338_v60, %v2342_v24  ;;  %v2569_v0 = vadd.f32 %v1257_v22, %v1240_v19 }
  0xf0   :  { %3337 = vst [vmem:[#allocation18_spill] sm:$0xff] %v2566_v4  ;;  %v623_v47 = vand.u32 7, %v405_v16  ;;  %v1933_v40 = vpop.eup %1932  ;;  %v2572_v29 = vadd.f32 %v2119_v57, %v381_v5  ;;  %1890 = vmatpush.bf16.msra.mxu3 %v1873_v15  ;;  %v2577_v9 = vadd.f32 %v1258_v39, %v1241_v26  ;;  %vm2581_vm8 = vcmp.le.s32.totalorder %v3304_v36, 6  ;;  %v1870_v39 = vld [vmem:[%s3293_s9] sm:$0xff] }
  0xf1   :  { %1693 = vmatpush.bf16.msra.mxu1 %v1873_v15  ;;  %v630_v1 = vand.u32 7, %v406_v23  ;;  %v374_v19 = vmul.f32 %v2110_v51, %v354_v2  ;;  %v330_v60 = vadd.f32 1.0, %v1933_v40  ;;  %v3340_v33 = vrot.slane %v2260_v50, 7 }
  0xf2   :  { %vm837_vm9 = vcmp.ge.s32.totalorder %v623_v47, 1  ;;  %v3341_v16 = vrot.slane %v2201_v58, 7  ;;  %vm2598_vm11 = vcmp.le.s32.totalorder %v623_v47, 6  ;;  %v2617_v47 = vmul.f32 %v2151_v14, %v2572_v29 }
  0xf3   :  { %vm2594_vm10 = vcmp.ge.s32.totalorder %v630_v1, 1  ;;  %v2603_v40 = vadd.f32 %v2119_v57, %v374_v19  ;;  %v346_v5 = vmul.f32 0.5, %v330_v60  ;;  %vm2605_vm12 = vcmp.le.s32.totalorder %v630_v1, 6  ;;  %v1871_v19 = vld [vmem:[%s3293_s9 + $0x8] sm:$0xff] }
  0xf4   :  { %v900_v15 = vsel %vm886_vm0, %v3341_v16, %v3340_v33  ;;  %v3348_v33 = vmov %v3341_v16  ;;  %v3349_v16 = vrot.slane %v2145_v10, 7  ;;  %3350 = vst [vmem:[#allocation19_spill] sm:$0xff] %v2617_v47  ;;  %1891 = vmatpush.bf16.msra.mxu3 %v1872_v55  ;;  %v3351_v60 = vrot.slane %v2336_v63, 1 }
  0xf5   :  { %1694 = vmatpush.bf16.msra.mxu1 %v1872_v55  ;;  %v3352_v36 = vrot.slane %v2260_v50, 1  ;;  %v877_v4 = vrot.slane %v2603_v40, 7  ;;  %v2644_v47 = vsel %vm2594_vm10, %v900_v15, 0.0  ;;  %v3358_v15 = vrot.slane %v2182_v45, 7 }
  0xf6   :  { %v901_v22 = vsel %vm886_vm0, %v3349_v16, %v3348_v33  ;;  %v3354_v16 = vrot.slane %v2201_v58, 1  ;;  %v3359_v23 = vrot.slane %v2545_v34, 7 }
  0xf7   :  { %v2622_v1 = vsel %vm837_vm9, %v901_v22, 0.0  ;;  %v980_v26 = vsel %vm967_vm2, %v3352_v36, %v3351_v60  ;;  %v3353_v33 = vmov %v3352_v36  ;;  %v2640_v22 = vmul.f32 %v2151_v14, %v2603_v40 }
  0xf8   :  { %v981_v6 = vsel %vm967_vm2, %v3354_v16, %v3353_v33  ;;  %v362_v36 = vmul.f32 %v346_v5, %v2400_v42  ;;  %v3356_v60 = vmov %v3354_v16  ;;  %v2659_v55 = vsel %vm2605_vm12, %v980_v26, 0.0  ;;  %1892 = vmatpush.bf16.msra.mxu3 %v1871_v19 }
  0xf9   :  { %3355 = vst [vmem:[#allocation20_spill] sm:$0xff] %v2640_v22  ;;  %v982_v33 = vsel %vm967_vm2, %v3357_v44, %v3356_v60  ;;  %v2655_v16 = vsel %vm2598_vm11, %v981_v6, 0.0  ;;  %v894_v42 = vsel %vm886_vm0, %v877_v4, %v3358_v15  ;;  %v2669_v5 = vsel %vm886_vm0, %v3359_v23, %v877_v4  ;;  %1695 = vmatpush.bf16.msra.mxu1 %v1871_v19 }
  0xfa   :  { %3360 = vst [vmem:[#allocation21_spill] sm:$0xff] %v2669_v5  ;;  %v1016_v44 = vsel %vm2581_vm8, %v982_v33, 0.0  ;;  %v1034_v6 = vmul.f32 %v2155_v18, %v2622_v1  ;;  %v382_v26 = vmul.f32 %v2110_v51, %v362_v36  ;;  %v943_v2 = vsel %vm2553_vm7, %v894_v42, 0.0 }
  0xfb   :  { %v2682_v4 = vmul.f32 %v2198_v56, %v1016_v44  ;;  %v1084_v24 = vmul.f32 %v2198_v56, %v2655_v16  ;;  %v1041_v60 = vmul.f32 %v2155_v18, %v943_v2  ;;  %v1125_v33 = vmul.f32 %v2254_v48, %v943_v2 }
  0xfc   :  { %v1067_v51 = vadd.f32 %v2225_v25, %v1034_v6  ;;  %v1167_v36 = vmul.f32 %v2257_v49, %v1016_v44  ;;  %v2691_v15 = vadd.f32 %v2119_v57, %v382_v26  ;;  %v1199_v13 = vmul.f32 %v2504_v32, %v2622_v1  ;;  %1893 = vmatpush.bf16.msra.mxu3 %v1870_v39 }
  0xfd   :  { %v1200_v19 = vmul.f32 %v2504_v32, %v2644_v47  ;;  %v1216_v42 = vmul.f32 %v2161_v21, %v2201_v58  ;;  %v1074_v23 = vadd.f32 %v2211_v7, %v1041_v60  ;;  %v1158_v2 = vadd.f32 %v2215_v8, %v1125_v33  ;;  %1696 = vmatpush.bf16.msra.mxu1 %v1870_v39 }
  0xfe   :  { %v1100_v22 = vadd.f32 %v1084_v24, %v1067_v51  ;;  %v1217_v25 = vmul.f32 %v2161_v21, %v2260_v50  ;;  %v885_v57 = vrot.slane %v2691_v15, 7  ;;  %v2707_v6 = vmul.f32 %v2151_v14, %v2691_v15 }
  0xff   :  { %v2711_v26 = vmul.f32 %v2161_v21, %v2691_v15  ;;  %v1107_v58 = vadd.f32 %v2474_v62, %v1074_v23  ;;  %v1191_v7 = vadd.f32 %v2492_v12, %v1158_v2  ;;  %v1232_v8 = vadd.f32 %v1216_v42, %v1199_v13 }
 0x100   :  { %3361 = vst [vmem:[#allocation22_spill] sm:$0xff] %v2707_v6  ;;  %v1233_v24 = vadd.f32 %v1217_v25, %v1200_v19  ;;  %v3363_v60 = vrot.slane %v2572_v29, 7  ;;  %v3364_v14 = vrot.slane %v2145_v10, 7  ;;  %v1249_v39 = vmul.f32 %v2525_v27, %v2655_v16  ;;  %v2734_v19 = vld [vmem:[%s3290_s6] ss:$0 sm:$0xff] }
 0x101   :  { %3362 = vst [vmem:[#allocation23_spill] sm:$0xff] %v2711_v26  ;;  %v1250_v62 = vmul.f32 %v2525_v27, %v2659_v55  ;;  %v1338_v12 = vadd.f32 %v1191_v7, %v2512_v30  ;;  %v1401_v13 = vadd.f32 %v2569_v0, %v1107_v58  ;;  %v415_v42 = vadd.s32 88, %v2121_v59 }
 0x102   :  { %v2719_v33 = vsel %vm886_vm0, %v3363_v60, %v885_v57  ;;  %v902_v51 = vsel %vm886_vm0, %v885_v57, %v3364_v14  ;;  %v416_v23 = vadd.s32 96, %v2121_v59  ;;  %v1265_v2 = vadd.f32 %v1249_v39, %v1232_v8 }
 0x103   :  { %v1266_v25 = vadd.f32 %v1250_v62, %v1233_v24  ;;  %v3365_v57 = vrot.slane %v2458_v31, 7  ;;  %v3366_v60 = vrot.slane %v2395_v43, 7  ;;  %v3368_v58 = vrot.slane %v2295_v46, 7 }
 0x104   :  { %v1402_v14 = vadd.f32 %v1338_v12, %v2577_v9  ;;  %v2752_v44 = vadd.f32 %v2734_v19, %v1401_v13  ;;  %v693_v8 = vand.u32 7, %v415_v42  ;;  %v700_v24 = vand.u32 7, %v416_v23 }
 0x105   :  { %v890_v30 = vsel %vm886_vm0, %v3366_v60, %v3365_v57  ;;  %v3367_v0 = vmov %v3366_v60  ;;  %v3369_v39 = vand.u32 7, %v2121_v59  ;;  %v3370_v62 = vrot.slane %v2519_v38, 1 }
 0x106   :  { %v891_v7 = vsel %vm886_vm0, %v3368_v58, %v3367_v0  ;;  %v3371_v57 = vrot.slane %v2458_v31, 1  ;;  %v3373_v0 = vrot.slane %v2395_v43, 1  ;;  %v1043_v12 = vmul.f32 %v2155_v18, %v2392_v3 }
 0x107   :  { %vm836_vm13 = vcmp.ge.s32.totalorder %v3369_v39, 1  ;;  %v2771_v13 = vadd.f32 %v2734_v19, %v1402_v14  ;;  %v1437_v42 = vmul.f32 %v2752_v44, %v2752_v44  ;;  %vm847_vm14 = vcmp.ge.s32.totalorder %v693_v8, 1 }
 0x108   :  { %v970_v46 = vsel %vm967_vm2, %v3371_v57, %v3370_v62  ;;  %v3372_v60 = vmov %v3371_v57  ;;  %v935_v23 = vsel %vm836_vm13, %v902_v51, 0.0  ;;  %vm848_vm15 = vcmp.ge.s32.totalorder %v700_v24, 1 }
 0x109   :  { %v971_v9 = vsel %vm967_vm2, %v3373_v0, %v3372_v60  ;;  %v1033_v58 = vmul.f32 %v2155_v18, %v935_v23  ;;  %v1117_v39 = vmul.f32 %v2254_v48, %v935_v23  ;;  %vm863_vm1 = vcmp.le.s32.totalorder %v693_v8, 6 }
 0x10a   :  { %v1438_v62 = vmul.f32 %v2771_v13, %v2771_v13  ;;  %v1453_v57 = vmul.f32 %v1437_v42, %v2752_v44  ;;  %vm864_vm3 = vcmp.le.s32.totalorder %v700_v24, 6  ;;  %v2780_v60 = vsel %vm847_vm14, %v891_v7, 0.0 }
 0x10b   :  { %v1066_v14 = vadd.f32 %v2190_v52, %v1033_v58  ;;  %v1150_v0 = vadd.f32 %v2194_v53, %v1117_v39  ;;  %v2784_v51 = vsel %vm848_vm15, %v890_v30, 0.0  ;;  %v2786_v5 = vsel %vm863_vm1, %v971_v9, 0.0 }
 0x10c   :  { %v1454_v23 = vmul.f32 %v1438_v62, %v2771_v13  ;;  %v1469_v45 = vmul.f32 0.044715, %v1453_v57  ;;  %v2789_v8 = vsel %vm864_vm3, %v970_v46, 0.0  ;;  %v1044_v26 = vmul.f32 %v2155_v18, %v2780_v60 }
 0x10d   :  { %v1099_v24 = vadd.f32 %v2682_v4, %v1066_v14  ;;  %v1183_v7 = vadd.f32 %v1167_v36, %v1150_v0  ;;  %v1076_v42 = vadd.f32 %v2329_v41, %v1043_v12  ;;  %v1093_v52 = vmul.f32 %v2198_v56, %v2463_v11 }
 0x10e   :  { %v1470_v53 = vmul.f32 0.044715, %v1454_v23  ;;  %v1485_v30 = vadd.f32 %v1469_v45, %v2752_v44  ;;  %v1077_v9 = vadd.f32 %v2406_v20, %v1044_v26  ;;  %v1094_v46 = vmul.f32 %v2198_v56, %v2786_v5 }
 0x10f   :  { %v1330_v58 = vadd.f32 %v1183_v7, %v1100_v22  ;;  %v1393_v39 = vadd.f32 %v1265_v2, %v1099_v24  ;;  %v1109_v62 = vadd.f32 %v1093_v52, %v1076_v42  ;;  %v1126_v4 = vmul.f32 %v2254_v48, %v2316_v35 }
 0x110   :  { %v1486_v36 = vadd.f32 %v1470_v53, %v2771_v13  ;;  %v1501_v41 = vmul.f32 0.7978846, %v1485_v30  ;;  %v1110_v12 = vadd.f32 %v1094_v46, %v1077_v9  ;;  %v1127_v57 = vmul.f32 %v2254_v48, %v2392_v3 }
 0x111   :  { %v1394_v14 = vadd.f32 %v1330_v58, %v1266_v25  ;;  %v2807_v45 = vadd.f32 %v2734_v19, %v1393_v39  ;;  %v1159_v20 = vadd.f32 %v2273_v17, %v1126_v4  ;;  %v1176_v22 = vmul.f32 %v2257_v49, %v2455_v37 }
 0x112   :  { %v1502_v26 = vmul.f32 0.7978846, %v1486_v36  ;;  %1934 = vtanh.f32 %v1501_v41  ;;  %v1160_v35 = vadd.f32 %v2352_v54, %v1127_v57  ;;  %v1177_v2 = vmul.f32 %v2257_v49, %v2463_v11 }
 0x113   :  { %v2816_v0 = vadd.f32 %v2734_v19, %v1394_v14  ;;  %v1429_v3 = vmul.f32 %v2807_v45, %v2807_v45  ;;  %v1192_v25 = vadd.f32 %v1176_v22, %v1159_v20  ;;  %v1209_v17 = vmul.f32 %v2504_v32, %v2780_v60 }
 0x114   :  { %1936 = vtanh.f32 %v1502_v26  ;;  %v1193_v23 = vadd.f32 %v1177_v2, %v1160_v35  ;;  %v1210_v37 = vmul.f32 %v2504_v32, %v2784_v51  ;;  %v1226_v54 = vmul.f32 %v2161_v21, %v2395_v43 }
 0x115   :  { %v1430_v11 = vmul.f32 %v2816_v0, %v2816_v0  ;;  %v1445_v24 = vmul.f32 %v1429_v3, %v2807_v45  ;;  %v1227_v7 = vmul.f32 %v2161_v21, %v2458_v31  ;;  %v1259_v42 = vmul.f32 %v2525_v27, %v2786_v5 }
 0x116   :  { %v1242_v52 = vadd.f32 %v1226_v54, %v1209_v17  ;;  %v1260_v53 = vmul.f32 %v2525_v27, %v2789_v8  ;;  %v1339_v30 = vadd.f32 %v1192_v25, %v1109_v62  ;;  %v1340_v9 = vadd.f32 %v1193_v23, %v1110_v12 }
 0x117   :  { %v1446_v46 = vmul.f32 %v1430_v11, %v2816_v0  ;;  %v1461_v43 = vmul.f32 0.044715, %v1445_v24  ;;  %v1243_v58 = vadd.f32 %v1227_v7, %v1210_v37  ;;  %v407_v39 = vadd.s32 24, %v2121_v59 }
 0x118   :  { %v1935_v4 = vpop.eup %1934  ;;  %v1275_v36 = vadd.f32 %v1259_v42, %v1242_v52  ;;  %v408_v41 = vadd.s32 32, %v2121_v59  ;;  %v3374_v57 = vrot.slane %v2415_v28, 7  ;;  %v3375_v14 = vrot.slane %v2336_v63, 7 }
 0x119   :  { %v3377_v12 = vrot.slane %v2260_v50, 7  ;;  %v1533_v26 = vadd.f32 1.0, %v1935_v4  ;;  %v1462_v35 = vmul.f32 0.044715, %v1446_v46  ;;  %v1477_v2 = vadd.f32 %v1461_v43, %v2807_v45 }
 0x11a   :  { %v898_v20 = vsel %vm886_vm0, %v3375_v14, %v3374_v57  ;;  %v3376_v62 = vmov %v3375_v14  ;;  %v1276_v3 = vadd.f32 %v1260_v53, %v1243_v58  ;;  %v1937_v25 = vpop.eup %1936  ;;  %v1403_v17 = vadd.f32 %v1339_v30, %v1275_v36 }
 0x11b   :  { %v899_v22 = vsel %vm886_vm0, %v3377_v12, %v3376_v62  ;;  %v637_v23 = vand.u32 7, %v407_v39  ;;  %v644_v37 = vand.u32 7, %v408_v41  ;;  %v3378_v54 = vrot.slane %v2477_v61, 1  ;;  %v2869_v39 = vld [vmem:[%s3291_s7] ss:$0 sm:$0xff] }
 0x11c   :  { %v3379_v11 = vrot.slane %v2415_v28, 1  ;;  %v1534_v50 = vadd.f32 1.0, %v1937_v25  ;;  %v1549_v7 = vmul.f32 0.5, %v1533_v26  ;;  %v1478_v42 = vadd.f32 %v1462_v35, %v2816_v0 }
 0x11d   :  { %v1493_v52 = vmul.f32 0.7978846, %v1477_v2  ;;  %v1404_v46 = vadd.f32 %v1340_v9, %v1276_v3  ;;  %v2859_v43 = vadd.f32 %v2734_v19, %v1403_v17  ;;  %vm839_vm4 = vcmp.ge.s32.totalorder %v637_v23, 1 }
 0x11e   :  { %v978_v24 = vsel %vm967_vm2, %v3379_v11, %v3378_v54  ;;  %vm2861_vm5 = vcmp.ge.s32.totalorder %v644_v37, 1  ;;  %v1550_v30 = vmul.f32 0.5, %v1534_v50  ;;  %v1565_v58 = vmul.f32 %v1549_v7, %v2752_v44  ;;  %v2881_v44 = vld [vmem:[%s3292_s8] ss:$0 sm:$0xff] }
 0x11f   :  { %v1494_v4 = vmul.f32 0.7978846, %v1478_v42  ;;  %1938 = vtanh.f32 %v1493_v52  ;;  %v2872_v9 = vadd.f32 %v2734_v19, %v1404_v46  ;;  %v1439_v36 = vmul.f32 %v2859_v43, %v2859_v43 }
 0x120   :  { %vm855_vm6 = vcmp.le.s32.totalorder %v637_v23, 6  ;;  %vm856_vm7 = vcmp.le.s32.totalorder %v644_v37, 6  ;;  %v1566_v41 = vmul.f32 %v1550_v30, %v2771_v13  ;;  %v1585_v57 = vmul.f32 %v2869_v39, %v1565_v58  ;;  %v3384_v30 = vld [vmem:[#allocation5_spill] sm:$0xff] }
 0x121   :  { %1940 = vtanh.f32 %v1494_v4  ;;  %v2883_v14 = vsel %vm839_vm4, %v899_v22, 0.0  ;;  %v1440_v62 = vmul.f32 %v2872_v9, %v2872_v9  ;;  %v1455_v12 = vmul.f32 %v1439_v36, %v2859_v43 }
 0x122   :  { %v2890_v26 = vsel %vm2861_vm5, %v898_v20, 0.0  ;;  %v3382_v13 = vmov %v3379_v11  ;;  %v3383_v35 = vrot.slane %v2336_v63, 1  ;;  %v1586_v3 = vmul.f32 %v2869_v39, %v1566_v41  ;;  %v3385_v41 = vld [vmem:[#allocation7_spill] sm:$0xff] }
 0x123   :  { %v1605_v22 = vadd.f32 %v2881_v44, %v1585_v57  ;;  %v2902_v17 = vsel %vm856_vm7, %v978_v24, 0.0  ;;  %v1456_v23 = vmul.f32 %v1440_v62, %v2872_v9  ;;  %v1471_v37 = vmul.f32 0.044715, %v1455_v12  ;;  %v3386_v12 = vld [vmem:[#allocation4_spill] sm:$0xff] }
 0x124   :  { %v979_v2 = vsel %vm967_vm2, %v3383_v35, %v3382_v13  ;;  %v1035_v20 = vmul.f32 %v2155_v18, %v2644_v47  ;;  %v1036_v54 = vmul.f32 %v2155_v18, %v2883_v14  ;;  %v1606_v50 = vadd.f32 %v2881_v44, %v1586_v3 }
 0x125   :  { %v2900_v25 = vsel %vm855_vm6, %v979_v2, 0.0  ;;  %v1939_v11 = vpop.eup %1938  ;;  %v1085_v7 = vmul.f32 %v2198_v56, %v2659_v55  ;;  %v1118_v24 = vmul.f32 %v2254_v48, %v2622_v1  ;;  %v1472_v46 = vmul.f32 0.044715, %v1456_v23 }
 0x126   :  { %v1086_v42 = vmul.f32 %v2198_v56, %v2900_v25  ;;  %v1525_v52 = vadd.f32 1.0, %v1939_v11  ;;  %v1487_v53 = vadd.f32 %v1471_v37, %v2859_v43  ;;  %v1068_v58 = vadd.f32 %v3384_v30, %v1035_v20  ;;  %v3387_v37 = vld [vmem:[#allocation6_spill] sm:$0xff] }
 0x127   :  { %v1941_v4 = vpop.eup %1940  ;;  %v1617_v36 = vpack.c.bf16 %v1606_v50, %v1605_v22  ;;  %v1069_v57 = vadd.f32 %v3385_v41, %v1036_v54  ;;  %v1119_v62 = vmul.f32 %v2254_v48, %v2644_v47  ;;  %v1151_v13 = vadd.f32 %v3386_v12, %v1118_v24 }
 0x128   :  { %v1526_v35 = vadd.f32 1.0, %v1941_v4  ;;  %v1541_v2 = vmul.f32 0.5, %v1525_v52  ;;  %v1488_v3 = vadd.f32 %v1472_v46, %v2872_v9  ;;  %v1503_v1 = vmul.f32 0.7978846, %v1487_v53 }
 0x129   :  { %1717 = vmatmul.bf16.vlgmr.msra.gmra.mxu3 %v1617_v36  ;;  %v1101_v23 = vadd.f32 %v1085_v7, %v1068_v58  ;;  %v1102_v11 = vadd.f32 %v1086_v42, %v1069_v57  ;;  %v1152_v6 = vadd.f32 %v3387_v37, %v1119_v62  ;;  %v1168_v22 = vmul.f32 %v2257_v49, %v2655_v16 }
 0x12a   :  { %v1542_v20 = vmul.f32 0.5, %v1526_v35  ;;  %v1557_v54 = vmul.f32 %v1541_v2, %v2807_v45  ;;  %v1504_v50 = vmul.f32 0.7978846, %v1488_v3  ;;  %1942 = vtanh.f32 %v1503_v1 }
 0x12b   :  { %v1169_v47 = vmul.f32 %v2257_v49, %v2659_v55  ;;  %v1184_v24 = vadd.f32 %v1168_v22, %v1151_v13  ;;  %v1201_v52 = vmul.f32 %v2504_v32, %v2883_v14  ;;  %v1202_v7 = vmul.f32 %v2504_v32, %v2890_v26 }
 0x12c   :  { %v1558_v42 = vmul.f32 %v1542_v20, %v2816_v0  ;;  %v1577_v46 = vmul.f32 %v2869_v39, %v1557_v54  ;;  %1944 = vtanh.f32 %v1504_v50  ;;  %v1218_v16 = vmul.f32 %v2161_v21, %v2336_v63 }
 0x12d   :  { %v1185_v45 = vadd.f32 %v1169_v47, %v1152_v6  ;;  %v1219_v53 = vmul.f32 %v2161_v21, %v2415_v28  ;;  %v1251_v55 = vmul.f32 %v2525_v27, %v2900_v25  ;;  %v1252_v30 = vmul.f32 %v2525_v27, %v2902_v17 }
 0x12e   :  { %v1578_v58 = vmul.f32 %v2869_v39, %v1558_v42  ;;  %v1597_v0 = vadd.f32 %v2881_v44, %v1577_v46  ;;  %v1234_v4 = vadd.f32 %v1218_v16, %v1201_v52  ;;  %v1331_v36 = vadd.f32 %v1184_v24, %v1101_v23 }
 0x12f   :  { %v1235_v41 = vadd.f32 %v1219_v53, %v1202_v7  ;;  %v1332_v57 = vadd.f32 %v1185_v45, %v1102_v11  ;;  %v417_v63 = vadd.s32 104, %v2121_v59  ;;  %v418_v6 = vadd.s32 112, %v2121_v59 }
 0x130   :  { %v1943_v62 = vpop.eup %1942  ;;  %v1598_v12 = vadd.f32 %v2881_v44, %v1578_v58  ;;  %v1267_v13 = vadd.f32 %v1251_v55, %v1234_v4  ;;  %v3388_v35 = vrot.slane %v2519_v38, 7  ;;  %v3389_v2 = vrot.slane %v2458_v31, 7 }
 0x131   :  { %v1045_v1 = vmul.f32 %v2155_v18, %v2784_v51  ;;  %v1535_v23 = vadd.f32 1.0, %v1943_v62  ;;  %v1268_v11 = vadd.f32 %v1252_v30, %v1235_v41  ;;  %v707_v37 = vand.u32 7, %v417_v63 }
 0x132   :  { %v889_v3 = vsel %vm886_vm0, %v3389_v2, %v3388_v35  ;;  %v714_v22 = vand.u32 7, %v418_v6  ;;  %v1945_v20 = vpop.eup %1944  ;;  %v1613_v54 = vpack.c.bf16 %v1598_v12, %v1597_v0  ;;  %v1395_v50 = vadd.f32 %v1331_v36, %v1267_v13 }
 0x133   :  { %v3390_v47 = vrot.slane %v2572_v29, 7  ;;  %v3391_v24 = vmov %v3388_v35  ;;  %v3392_v52 = vrot.slane %v2572_v29, 1  ;;  %v3393_v7 = vrot.slane %v2519_v38, 1 }
 0x134   :  { %v1536_v46 = vadd.f32 1.0, %v1945_v20  ;;  %v1551_v16 = vmul.f32 0.5, %v1535_v23  ;;  %v1396_v45 = vadd.f32 %v1332_v57, %v1268_v11  ;;  %vm849_vm8 = vcmp.ge.s32.totalorder %v707_v37, 1  ;;  %1697 = vmatmul.bf16.vlgmr.msra.gmra.mxu1 %v1613_v54 }
 0x135   :  { %v888_v31 = vsel %vm886_vm0, %v3391_v24, %v3390_v47  ;;  %v969_v42 = vsel %vm967_vm2, %v3393_v7, %v3392_v52  ;;  %v2969_v53 = vadd.f32 %v2734_v19, %v1395_v50  ;;  %vm850_vm9 = vcmp.ge.s32.totalorder %v714_v22, 1  ;;  %v3397_v50 = vld [vmem:[#allocation16_spill] sm:$0xff] }
 0x136   :  { %vm865_vm10 = vcmp.le.s32.totalorder %v707_v37, 6  ;;  %vm866_vm11 = vcmp.le.s32.totalorder %v714_v22, 6  ;;  %v1552_v55 = vmul.f32 0.5, %v1536_v46  ;;  %v1567_v30 = vmul.f32 %v1551_v16, %v2859_v43 }
 0x137   :  { %v2973_v58 = vadd.f32 %v2734_v19, %v1396_v45  ;;  %v2975_v0 = vsel %vm849_vm8, %v889_v3, 0.0  ;;  %v1431_v4 = vmul.f32 %v2969_v53, %v2969_v53  ;;  %v2979_v36 = vsel %vm850_vm9, %v888_v31, 0.0  ;;  %v3396_v3 = vld [vmem:[#allocation12_spill] sm:$0xff]  ;;  %v3398_v45 = vld [vmem:[#allocation9_spill] sm:$0xff] }
 0x138   :  { %v3394_v41 = vrot.slane %v2691_v15, 1  ;;  %v3395_v57 = vmov %v3392_v52  ;;  %v2987_v6 = vsel %vm865_vm10, %v969_v42, 0.0  ;;  %v1568_v43 = vmul.f32 %v1552_v55, %v2872_v9 }
 0x139   :  { %v1587_v62 = vmul.f32 %v2869_v39, %v1567_v30  ;;  %v1432_v12 = vmul.f32 %v2973_v58, %v2973_v58  ;;  %v1447_v35 = vmul.f32 %v1431_v4, %v2969_v53  ;;  %v1046_v2 = vmul.f32 %v2155_v18, %v2975_v0 }
 0x13a   :  { %v968_v63 = vsel %vm967_vm2, %v3395_v57, %v3394_v41  ;;  %v1078_v23 = vadd.f32 %v3396_v3, %v1045_v1  ;;  %v1095_v11 = vmul.f32 %v2198_v56, %v2789_v8  ;;  %v1588_v37 = vmul.f32 %v2869_v39, %v1568_v43  ;;  %v3399_v41 = vld [vmem:[#allocation13_spill] sm:$0xff] }
 0x13b   :  { %v2993_v13 = vsel %vm866_vm11, %v968_v63, 0.0  ;;  %v1607_v9 = vadd.f32 %v2881_v44, %v1587_v62  ;;  %v1448_v22 = vmul.f32 %v1432_v12, %v2973_v58  ;;  %v1096_v20 = vmul.f32 %v2198_v56, %v2987_v6 }
 0x13c   :  { %v1463_v54 = vmul.f32 0.044715, %v1447_v35  ;;  %v1079_v47 = vadd.f32 %v3397_v50, %v1046_v2  ;;  %v1111_v24 = vadd.f32 %v1095_v11, %v1078_v23  ;;  %v1128_v31 = vmul.f32 %v2254_v48, %v2780_v60 }
 0x13d   :  { %v1608_v1 = vadd.f32 %v2881_v44, %v1588_v37  ;;  %v1464_v52 = vmul.f32 0.044715, %v1448_v22  ;;  %v1129_v7 = vmul.f32 %v2254_v48, %v2784_v51  ;;  %v1178_v42 = vmul.f32 %v2257_v49, %v2786_v5 }
 0x13e   :  { %v1479_v46 = vadd.f32 %v1463_v54, %v2969_v53  ;;  %v1112_v16 = vadd.f32 %v1096_v20, %v1079_v47  ;;  %v1161_v55 = vadd.f32 %v3398_v45, %v1128_v31  ;;  %v1179_v30 = vmul.f32 %v2257_v49, %v2789_v8 }
 0x13f   :  { %v1618_v4 = vpack.c.bf16 %v1608_v1, %v1607_v9  ;;  %v1480_v60 = vadd.f32 %v1464_v52, %v2973_v58  ;;  %v1162_v57 = vadd.f32 %v3399_v41, %v1129_v7  ;;  %v1211_v63 = vmul.f32 %v2504_v32, %v2975_v0 }
 0x140   :  { %v1495_v51 = vmul.f32 0.7978846, %v1479_v46  ;;  %v1194_v43 = vadd.f32 %v1178_v42, %v1161_v55  ;;  %v1212_v5 = vmul.f32 %v2504_v32, %v2979_v36  ;;  %v1228_v62 = vmul.f32 %v2161_v21, %v2519_v38 }
 0x141   :  { %1722 = vmatmul.bf16.gmra.mxu3 %v1618_v4  ;;  %v1496_v12 = vmul.f32 0.7978846, %v1480_v60  ;;  %v1195_v35 = vadd.f32 %v1179_v30, %v1162_v57  ;;  %v1229_v8 = vmul.f32 %v2161_v21, %v2572_v29  ;;  %v1261_v2 = vmul.f32 %v2525_v27, %v2987_v6 }
 0x142   :  { %1946 = vtanh.f32 %v1495_v51  ;;  %v1244_v3 = vadd.f32 %v1228_v62, %v1211_v63  ;;  %v1262_v23 = vmul.f32 %v2525_v27, %v2993_v13  ;;  %v1341_v11 = vadd.f32 %v1194_v43, %v1111_v24 }
 0x143   :  { %1948 = vtanh.f32 %v1496_v12  ;;  %v1245_v37 = vadd.f32 %v1229_v8, %v1212_v5  ;;  %v1342_v9 = vadd.f32 %v1195_v35, %v1112_v16  ;;  %v409_v38 = vadd.s32 40, %v2121_v59 }
 0x144   :  { %v1277_v22 = vadd.f32 %v1261_v2, %v1244_v3  ;;  %v410_v20 = vadd.s32 48, %v2121_v59  ;;  %v3400_v54 = vrot.slane %v2545_v34, 7  ;;  %v3401_v50 = vrot.slane %v2477_v61, 7 }
 0x145   :  { %v3403_v1 = vrot.slane %v2415_v28, 7  ;;  %v1278_v52 = vadd.f32 %v1262_v23, %v1245_v37  ;;  %v651_v7 = vand.u32 7, %v409_v38  ;;  %v3404_v42 = vrot.slane %v2603_v40, 1  ;;  %v3408_v38 = vld [vmem:[#allocation10_spill] sm:$0xff] }
 0x146   :  { %v896_v47 = vsel %vm886_vm0, %v3401_v50, %v3400_v54  ;;  %v3402_v31 = vmov %v3401_v50  ;;  %v3405_v46 = vrot.slane %v2545_v34, 1  ;;  %v3407_v55 = vrot.slane %v2477_v61, 1 }
 0x147   :  { %v897_v24 = vsel %vm886_vm0, %v3403_v1, %v3402_v31  ;;  %v1405_v28 = vadd.f32 %v1341_v11, %v1277_v22  ;;  %v658_v4 = vand.u32 7, %v410_v20  ;;  %v1037_v60 = vmul.f32 %v2155_v18, %v2890_v26 }
 0x148   :  { %v976_v16 = vsel %vm967_vm2, %v3405_v46, %v3404_v42  ;;  %v3406_v45 = vmov %v3405_v46  ;;  %v1087_v41 = vmul.f32 %v2198_v56, %v2902_v17  ;;  %v1406_v57 = vadd.f32 %v1342_v9, %v1278_v52  ;;  %v1947_v51 = vpop.eup %1946  ;;  %v3410_v42 = vld [vmem:[#allocation8_spill] sm:$0xff] }
 0x149   :  { %v977_v30 = vsel %vm967_vm2, %v3407_v55, %v3406_v45  ;;  %vm841_vm0 = vcmp.ge.s32.totalorder %v651_v7, 1  ;;  %vm857_vm12 = vcmp.le.s32.totalorder %v651_v7, 6  ;;  %v1120_v63 = vmul.f32 %v2254_v48, %v2883_v14  ;;  %v1949_v62 = vpop.eup %1948 }
 0x14a   :  { %v3065_v43 = vadd.f32 %v2734_v19, %v1405_v28  ;;  %vm842_vm13 = vcmp.ge.s32.totalorder %v658_v4, 1  ;;  %vm858_vm14 = vcmp.le.s32.totalorder %v658_v4, 6  ;;  %v3067_v5 = vsel %vm841_vm0, %v897_v24, 0.0 }
 0x14b   :  { %v1527_v12 = vadd.f32 1.0, %v1947_v51  ;;  %v3070_v35 = vadd.f32 %v2734_v19, %v1406_v57  ;;  %v3072_v8 = vsel %vm842_vm13, %v896_v47, 0.0  ;;  %v3074_v2 = vsel %vm857_vm12, %v977_v30, 0.0  ;;  %v3409_v47 = vld [vmem:[#allocation14_spill] sm:$0xff]  ;;  %v3411_v30 = vld [vmem:[#allocation11_spill] sm:$0xff] }
 0x14c   :  { %v1528_v3 = vadd.f32 1.0, %v1949_v62  ;;  %v1441_v14 = vmul.f32 %v3065_v43, %v3065_v43  ;;  %v3078_v23 = vsel %vm858_vm14, %v976_v16, 0.0  ;;  %v1038_v11 = vmul.f32 %v2155_v18, %v3067_v5 }
 0x14d   :  { %v1543_v37 = vmul.f32 0.5, %v1527_v12  ;;  %v1442_v9 = vmul.f32 %v3070_v35, %v3070_v35  ;;  %v1070_v22 = vadd.f32 %v3408_v38, %v1037_v60  ;;  %v1088_v20 = vmul.f32 %v2198_v56, %v3074_v2 }
 0x14e   :  { %v1544_v54 = vmul.f32 0.5, %v1528_v3  ;;  %v1457_v50 = vmul.f32 %v1441_v14, %v3065_v43  ;;  %v1071_v31 = vadd.f32 %v3409_v47, %v1038_v11  ;;  %v1121_v1 = vmul.f32 %v2254_v48, %v2890_v26 }
 0x14f   :  { %v1559_v24 = vmul.f32 %v1543_v37, %v2969_v53  ;;  %v1458_v52 = vmul.f32 %v1442_v9, %v3070_v35  ;;  %v1103_v7 = vadd.f32 %v1087_v41, %v1070_v22  ;;  %v1153_v46 = vadd.f32 %v3410_v42, %v1120_v63 }
 0x150   :  { %v1560_v16 = vmul.f32 %v1544_v54, %v2973_v58  ;;  %v1473_v45 = vmul.f32 0.044715, %v1457_v50  ;;  %v1104_v55 = vadd.f32 %v1088_v20, %v1071_v31  ;;  %v1154_v28 = vadd.f32 %v3411_v30, %v1121_v1 }
 0x151   :  { %v1579_v4 = vmul.f32 %v2869_v39, %v1559_v24  ;;  %v1474_v60 = vmul.f32 0.044715, %v1458_v52  ;;  %v1170_v57 = vmul.f32 %v2257_v49, %v2900_v25  ;;  %v1171_v26 = vmul.f32 %v2257_v49, %v2902_v17 }
 0x152   :  { %v1580_v53 = vmul.f32 %v2869_v39, %v1560_v16  ;;  %v1489_v41 = vadd.f32 %v1473_v45, %v3065_v43  ;;  %v1203_v58 = vmul.f32 %v2504_v32, %v3067_v5  ;;  %v1204_v63 = vmul.f32 %v2504_v32, %v3072_v8 }
 0x153   :  { %v1599_v51 = vadd.f32 %v2881_v44, %v1579_v4  ;;  %v1490_v62 = vadd.f32 %v1474_v60, %v3070_v35  ;;  %v1186_v12 = vadd.f32 %v1170_v57, %v1153_v46  ;;  %v1187_v3 = vadd.f32 %v1171_v26, %v1154_v28  ;;  %v3415_v4 = vld [vmem:[#allocation19_spill] sm:$0xff]  ;;  %v3416_v26 = vld [vmem:[#allocation17_spill] sm:$0xff] }
 0x154   :  { %v1600_v25 = vadd.f32 %v2881_v44, %v1580_v53  ;;  %v1505_v14 = vmul.f32 0.7978846, %v1489_v41  ;;  %v1220_v17 = vmul.f32 %v2161_v21, %v2477_v61  ;;  %v1221_v11 = vmul.f32 %v2161_v21, %v2545_v34 }
 0x155   :  { %v1506_v37 = vmul.f32 0.7978846, %v1490_v62  ;;  %v1253_v9 = vmul.f32 %v2525_v27, %v3074_v2  ;;  %v1254_v38 = vmul.f32 %v2525_v27, %v3078_v23  ;;  %v1333_v22 = vadd.f32 %v1186_v12, %v1103_v7 }
 0x156   :  { %v1614_v20 = vpack.c.bf16 %v1600_v25, %v1599_v51  ;;  %1950 = vtanh.f32 %v1505_v14  ;;  %v1236_v54 = vadd.f32 %v1220_v17, %v1203_v58  ;;  %v1237_v50 = vadd.f32 %v1221_v11, %v1204_v63 }
 0x157   :  { %1952 = vtanh.f32 %v1506_v37  ;;  %v1334_v47 = vadd.f32 %v1187_v3, %v1104_v55  ;;  %v419_v31 = vadd.s32 120, %v2121_v59  ;;  %v3412_v61 = vrot.slane %v2145_v10, 1 }
 0x158   :  { %v3413_v1 = vrot.slane %v2691_v15, 1  ;;  %1702 = vmatmul.bf16.gmra.mxu1 %v1614_v20  ;;  %v1269_v52 = vadd.f32 %v1253_v9, %v1236_v54  ;;  %v1270_v42 = vadd.f32 %v1254_v38, %v1237_v50  ;;  %v1047_v7 = vmul.f32 %v2155_v18, %v2979_v36  ;;  %v3414_v15 = vld [vmem:[#allocation2_spill] sm:$0xff] }
 0x159   :  { %v1097_v46 = vmul.f32 %v2198_v56, %v2993_v13  ;;  %v721_v16 = vand.u32 7, %v419_v31  ;;  %v1130_v45 = vmul.f32 %v2254_v48, %v2975_v0  ;;  %v1131_v10 = vmul.f32 %v2254_v48, %v2979_v36 }
 0x15a   :  { %v983_v24 = vsel %vm967_vm2, %v3413_v1, %v3412_v61  ;;  %v1148_v55 = vmul.f32 %v3414_v15, %v2572_v29  ;;  %v1397_v30 = vadd.f32 %v1333_v22, %v1269_v52  ;;  %v1398_v28 = vadd.f32 %v1334_v47, %v1270_v42  ;;  %v3418_v1 = vld [vmem:[#allocation23_spill] sm:$0xff] }
 0x15b   :  { %v1080_v60 = vadd.f32 %v3415_v4, %v1047_v7  ;;  %v1180_v57 = vmul.f32 %v2257_v49, %v2987_v6  ;;  %vm851_vm15 = vcmp.ge.s32.totalorder %v721_v16, 1  ;;  %vm867_vm1 = vcmp.le.s32.totalorder %v721_v16, 6  ;;  %v3419_v4 = vld [vmem:[#allocation3_spill] sm:$0xff] }
 0x15c   :  { %v1163_v53 = vadd.f32 %v3416_v26, %v1130_v45  ;;  %v1164_v41 = vadd.f32 %v1148_v55, %v1131_v10  ;;  %v1951_v58 = vpop.eup %1950  ;;  %v3140_v0 = vadd.f32 %v2734_v19, %v1397_v30  ;;  %v3143_v36 = vadd.f32 %v2734_v19, %v1398_v28 }
 0x15d   :  { %v950_v29 = vsel %vm851_vm15, %v2719_v33, 0.0  ;;  %v1031_v63 = vsel %vm867_vm1, %v983_v24, 0.0  ;;  %v1953_v51 = vpop.eup %1952  ;;  %v1537_v62 = vadd.f32 1.0, %v1951_v58  ;;  %v1113_v3 = vadd.f32 %v1097_v46, %v1080_v60  ;;  %v3417_v33 = vld [vmem:[#allocation22_spill] sm:$0xff] }
 0x15e   :  { %v1048_v12 = vmul.f32 %v2155_v18, %v950_v29  ;;  %v1098_v6 = vmul.f32 %v2198_v56, %v1031_v63  ;;  %v1538_v25 = vadd.f32 1.0, %v1953_v51  ;;  %v1433_v14 = vmul.f32 %v3140_v0, %v3140_v0 }
 0x15f   :  { %v1434_v17 = vmul.f32 %v3143_v36, %v3143_v36  ;;  %v1181_v11 = vmul.f32 %v2257_v49, %v2993_v13  ;;  %v1553_v37 = vmul.f32 0.5, %v1537_v62  ;;  %v1196_v38 = vadd.f32 %v1180_v57, %v1163_v53 }
 0x160   :  { %v1081_v9 = vadd.f32 %v3417_v33, %v1048_v12  ;;  %v1213_v22 = vmul.f32 %v2504_v32, %v950_v29  ;;  %v1554_v20 = vmul.f32 0.5, %v1538_v25  ;;  %v1449_v54 = vmul.f32 %v1433_v14, %v3140_v0 }
 0x161   :  { %v1450_v50 = vmul.f32 %v1434_v17, %v3143_v36  ;;  %v1197_v47 = vadd.f32 %v1181_v11, %v1164_v41  ;;  %v1569_v31 = vmul.f32 %v1553_v37, %v3065_v43  ;;  %v1263_v52 = vmul.f32 %v2525_v27, %v1031_v63  ;;  %v3423_v37 = vld [vmem:[#allocation18_spill] sm:$0xff] }
 0x162   :  { %v1114_v61 = vadd.f32 %v1098_v6, %v1081_v9  ;;  %v1246_v24 = vadd.f32 %v3418_v1, %v1213_v22  ;;  %v1570_v13 = vmul.f32 %v1554_v20, %v3070_v35  ;;  %v1465_v42 = vmul.f32 0.044715, %v1449_v54  ;;  %v3422_v6 = vld [vmem:[#allocation21_spill] sm:$0xff]  ;;  %v3425_v1 = vld [vmem:[#allocation15_spill] sm:$0xff] }
 0x163   :  { %v1466_v7 = vmul.f32 0.044715, %v1450_v50  ;;  %v1343_v46 = vadd.f32 %v1196_v38, %v1113_v3  ;;  %v1589_v16 = vmul.f32 %v2869_v39, %v1569_v31  ;;  %v411_v55 = vadd.s32 56, %v2121_v59  ;;  %v3424_v50 = vld [vmem:[#allocation20_spill] sm:$0xff] }
 0x164   :  { %v1279_v45 = vadd.f32 %v1263_v52, %v1246_v24  ;;  %v1344_v10 = vadd.f32 %v1197_v47, %v1114_v61  ;;  %v1590_v30 = vmul.f32 %v2869_v39, %v1570_v13  ;;  %v1481_v43 = vadd.f32 %v1465_v42, %v3140_v0 }
 0x165   :  { %v1482_v28 = vadd.f32 %v1466_v7, %v3143_v36  ;;  %v3420_v60 = vrot.slane %v3419_v4, 1  ;;  %v3421_v27 = vrot.slane %v2603_v40, 1  ;;  %v1609_v57 = vadd.f32 %v2881_v44, %v1589_v16 }
 0x166   :  { %v1407_v26 = vadd.f32 %v1343_v46, %v1279_v45  ;;  %v3175_v53 = vadd.f32 %v2734_v19, %v1344_v10  ;;  %v665_v41 = vand.u32 7, %v411_v55  ;;  %v1610_v58 = vadd.f32 %v2881_v44, %v1590_v30  ;;  %v1966_v10 = vld [vmem:[%s3288_s5 + $0x8] ss:$0 sm:$0xff] }
 0x167   :  { %v975_v35 = vsel %vm967_vm2, %v3421_v27, %v3420_v60  ;;  %v1497_v29 = vmul.f32 0.7978846, %v1481_v43  ;;  %v1498_v63 = vmul.f32 0.7978846, %v1482_v28  ;;  %v1039_v51 = vmul.f32 %v2155_v18, %v3072_v8 }
 0x168   :  { %v3181_v62 = vadd.f32 %v2734_v19, %v1407_v26  ;;  %v1444_v59 = vmul.f32 %v3175_v53, %v3175_v53  ;;  %vm843_vm2 = vcmp.ge.s32.totalorder %v665_v41, 1  ;;  %vm859_vm3 = vcmp.le.s32.totalorder %v665_v41, 6 }
 0x169   :  { %v1619_v12 = vpack.c.bf16 %v1610_v58, %v1609_v57  ;;  %1954 = vtanh.f32 %v1497_v29  ;;  %v942_v3 = vsel %vm843_vm2, %v3422_v6, 0.0  ;;  %v1023_v25 = vsel %vm859_vm3, %v975_v35, 0.0 }
 0x16a   :  { %1956 = vtanh.f32 %v1498_v63  ;;  %v1443_v14 = vmul.f32 %v3181_v62, %v3181_v62  ;;  %v1460_v17 = vmul.f32 %v1444_v59, %v3175_v53  ;;  %v1040_v11 = vmul.f32 %v2155_v18, %v942_v3 }
 0x16b   :  { %1727 = vmatmul.bf16.gmra.mxu3 %v1619_v12  ;;  %v1072_v33 = vadd.f32 %v3423_v37, %v1039_v51  ;;  %v1089_v9 = vmul.f32 %v2198_v56, %v3078_v23  ;;  %v1090_v38 = vmul.f32 %v2198_v56, %v1023_v25  ;;  %v1122_v22 = vmul.f32 %v2254_v48, %v3067_v5 }
 0x16c   :  { %v1459_v20 = vmul.f32 %v1443_v14, %v3181_v62  ;;  %v1476_v54 = vmul.f32 0.044715, %v1460_v17  ;;  %v1073_v47 = vadd.f32 %v3424_v50, %v1040_v11  ;;  %v1123_v31 = vmul.f32 %v2254_v48, %v3072_v8 }
 0x16d   :  { %v1105_v18 = vadd.f32 %v1089_v9, %v1072_v33  ;;  %v1140_v61 = vmul.f32 %v3414_v15, %v2545_v34  ;;  %v1155_v24 = vadd.f32 %v3425_v1, %v1122_v22  ;;  %v1172_v56 = vmul.f32 %v2257_v49, %v3074_v2 }
 0x16e   :  { %v1475_v52 = vmul.f32 0.044715, %v1459_v20  ;;  %v1492_v5 = vadd.f32 %v1476_v54, %v3175_v53  ;;  %v1106_v13 = vadd.f32 %v1090_v38, %v1073_v47  ;;  %v1173_v42 = vmul.f32 %v2257_v49, %v3078_v23 }
 0x16f   :  { %v1955_v7 = vpop.eup %1954  ;;  %v1222_v48 = vmul.f32 %v2161_v21, %v2603_v40  ;;  %v1156_v8 = vadd.f32 %v1140_v61, %v1123_v31  ;;  %v1188_v46 = vadd.f32 %v1172_v56, %v1155_v24  ;;  %v1205_v34 = vmul.f32 %v2504_v32, %v942_v3 }
 0x170   :  { %v1957_v15 = vpop.eup %1956  ;;  %v1529_v16 = vadd.f32 1.0, %v1955_v7  ;;  %v1491_v45 = vadd.f32 %v1475_v52, %v3181_v62  ;;  %v1508_v2 = vmul.f32 0.7978846, %v1492_v5  ;;  %v1255_v55 = vmul.f32 %v1966_v10, %v1023_v25 }
 0x171   :  { %v1530_v30 = vadd.f32 1.0, %v1957_v15  ;;  %v1189_v49 = vadd.f32 %v1173_v42, %v1156_v8  ;;  %v1238_v23 = vadd.f32 %v1222_v48, %v1205_v34  ;;  %v1335_v43 = vadd.f32 %v1188_v46, %v1105_v18  ;;  %v1901_v34 = vld [vmem:[%s3294_s10] ss:$0 sm:$0xff] }
 0x172   :  { %v1545_v28 = vmul.f32 0.5, %v1529_v16  ;;  %v1507_v21 = vmul.f32 0.7978846, %v1491_v45  ;;  %1958 = vtanh.f32 %v1508_v2 }
 0x173   :  { %v1546_v40 = vmul.f32 0.5, %v1530_v30  ;;  %v1271_v4 = vadd.f32 %v1255_v55, %v1238_v23  ;;  %v1336_v32 = vadd.f32 %v1189_v49, %v1106_v13 }
 0x174   :  { %v1561_v60 = vmul.f32 %v1545_v28, %v3140_v0  ;;  %1960 = vtanh.f32 %v1507_v21 }
 0x175   :  { %v1562_v27 = vmul.f32 %v1546_v40, %v3143_v36  ;;  %v1399_v35 = vadd.f32 %v1335_v43, %v1271_v4  ;;  %v1420_v57 = vadd.f32 %v2734_v19, %v1336_v32 }
 0x176   :  { %v1581_v26 = vmul.f32 %v2869_v39, %v1561_v60 }
 0x177   :  { %v1582_v41 = vmul.f32 %v2869_v39, %v1562_v27  ;;  %v1419_v58 = vadd.f32 %v2734_v19, %v1399_v35  ;;  %v1436_v29 = vmul.f32 %v1420_v57, %v1420_v57 }
 0x178   :  { %v1959_v63 = vpop.eup %1958  ;;  %v1601_v51 = vadd.f32 %v2881_v44, %v1581_v26 }
 0x179   :  { %v1602_v59 = vadd.f32 %v2881_v44, %v1582_v41  ;;  %v1540_v12 = vadd.f32 1.0, %v1959_v63  ;;  %v1435_v0 = vmul.f32 %v1419_v58, %v1419_v58  ;;  %v1452_v6 = vmul.f32 %v1436_v29, %v1420_v57 }
 0x17a   :  { %v1961_v3 = vpop.eup %1960 }
 0x17b   :  { %v1615_v36 = vpack.c.bf16 %v1602_v59, %v1601_v51  ;;  %v1539_v25 = vadd.f32 1.0, %v1961_v3  ;;  %v1556_v14 = vmul.f32 0.5, %v1540_v12  ;;  %v1451_v17 = vmul.f32 %v1435_v0, %v1419_v58 }
 0x17c   :  { %v1468_v11 = vmul.f32 0.044715, %v1452_v6 }
 0x17d   :  { %1707 = vmatmul.bf16.gmra.mxu1 %v1615_v36  ;;  %v1555_v37 = vmul.f32 0.5, %v1539_v25  ;;  %v1572_v33 = vmul.f32 %v1556_v14, %v3175_v53  ;;  %v1467_v19 = vmul.f32 0.044715, %v1451_v17 }
 0x17e   :  { %v1484_v9 = vadd.f32 %v1468_v11, %v1420_v57 }
 0x17f   :  { %v1571_v38 = vmul.f32 %v1555_v37, %v3181_v62  ;;  %v1592_v22 = vmul.f32 %v2869_v39, %v1572_v33  ;;  %v1483_v20 = vadd.f32 %v1467_v19, %v1419_v58 }
 0x180   :  { %v1500_v54 = vmul.f32 0.7978846, %v1484_v9 }
 0x181   :  { %v1591_v50 = vmul.f32 %v2869_v39, %v1571_v38  ;;  %v1612_v47 = vadd.f32 %v2881_v44, %v1592_v22  ;;  %v1499_v31 = vmul.f32 0.7978846, %v1483_v20 }
 0x182   :  { %1962 = vtanh.f32 %v1500_v54 }
 0x183   :  { %v1611_v18 = vadd.f32 %v2881_v44, %v1591_v50  ;;  %1964 = vtanh.f32 %v1499_v31 }
 0x185   :  { %v1620_v61 = vpack.c.bf16 %v1612_v47, %v1611_v18 }
 0x187   :  { %1732 = vmatmul.bf16.gmra.mxu3 %v1620_v61 }
 0x188   :  { %v1963_v53 = vpop.eup %1962 }
 0x189   :  { %v1965_v1 = vpop.eup %1964  ;;  %v1532_v24 = vadd.f32 1.0, %v1963_v53 }
 0x18a   :  { %v1531_v56 = vadd.f32 1.0, %v1965_v1 }
 0x18b   :  { %v1548_v62 = vmul.f32 0.5, %v1532_v24 }
 0x18c   :  { %v1547_v52 = vmul.f32 0.5, %v1531_v56 }
 0x18d   :  { %v1564_v5 = vmul.f32 %v1548_v62, %v1420_v57 }
 0x18e   :  { %v1563_v13 = vmul.f32 %v1547_v52, %v1419_v58 }
 0x18f   :  { %v1584_v42 = vmul.f32 %v2869_v39, %v1564_v5 }
 0x190   :  { %v1583_v7 = vmul.f32 %v2869_v39, %v1563_v13 }
 0x191   :  { %v1604_v48 = vadd.f32 %v2881_v44, %v1584_v42 }
 0x192   :  { %v1603_v8 = vadd.f32 %v2881_v44, %v1583_v7 }
 0x194   :  { %v1616_v46 = vpack.c.bf16 %v1604_v48, %v1603_v8 }
 0x196   :  { %1712 = vmatmul.bf16.gmra.mxu1 %v1616_v46 }
 0x1ac   :  { %v1718_v15 = vpop.f32.mrf.mxu3 }
 0x1ad   :  { %v1719_v16 = vadd.f32 %v1901_v34, %v1718_v15 }
 0x1af   :  { %1746 = vst [vmem:[%s3295_s11 + $0x40] sm:$0xff] %v1719_v16 }
 0x1b1   :  { %v1698_v45 = vpop.f32.mrf.mxu1 }
 0x1b2   :  { %v1699_v2 = vadd.f32 %v1901_v34, %v1698_v45 }
 0x1b4   :  { %1738 = vst [vmem:[%s3295_s11] sm:$0xff] %v1699_v2  ;;  %v1720_v39 = vpop.f32.mrf.mxu3 }
 0x1b5   :  { %v1721_v44 = vadd.f32 %v1901_v34, %v1720_v39 }
 0x1b7   :  { %1747 = vst [vmem:[%s3295_s11 + $0x48] sm:$0xff] %v1721_v44 }
 0x1b9   :  { %v1700_v10 = vpop.f32.mrf.mxu1 }
 0x1ba   :  { %v1701_v55 = vadd.f32 %v1901_v34, %v1700_v10 }
 0x1bc   :  { %1739 = vst [vmem:[%s3295_s11 + $0x8] sm:$0xff] %v1701_v55 }
 0x1c4   :  { %v1723_v30 = vpop.f32.mrf.mxu3 }
 0x1c5   :  { %v1724_v49 = vadd.f32 %v1901_v34, %v1723_v30 }
 0x1c7   :  { %1748 = vst [vmem:[%s3295_s11 + $0x50] sm:$0xff] %v1724_v49 }
 0x1cc   :  { %v1725_v23 = vpop.f32.mrf.mxu3 }
 0x1cd   :  { %v1726_v43 = vadd.f32 %v1901_v34, %v1725_v23 }
 0x1cf   :  { %1749 = vst [vmem:[%s3295_s11 + $0x58] sm:$0xff] %v1726_v43 }
 0x1d5   :  { %v1703_v28 = vpop.f32.mrf.mxu1 }
 0x1d6   :  { %v1704_v21 = vadd.f32 %v1901_v34, %v1703_v28 }
 0x1d8   :  { %1740 = vst [vmem:[%s3295_s11 + $0x10] sm:$0xff] %v1704_v21 }
 0x1dd   :  { %v1705_v40 = vpop.f32.mrf.mxu1 }
 0x1de   :  { %v1706_v4 = vadd.f32 %v1901_v34, %v1705_v40 }
 0x1e0   :  { %1741 = vst [vmem:[%s3295_s11 + $0x18] sm:$0xff] %v1706_v4 }
 0x1ee   :  { %v1728_v32 = vpop.f32.mrf.mxu3 }
 0x1ef   :  { %v1729_v60 = vadd.f32 %v1901_v34, %v1728_v32 }
 0x1f1   :  { %1750 = vst [vmem:[%s3295_s11 + $0x60] sm:$0xff] %v1729_v60 }
 0x1f6   :  { %v1730_v27 = vpop.f32.mrf.mxu3 }
 0x1f7   :  { %v1731_v35 = vadd.f32 %v1901_v34, %v1730_v27 }
 0x1f9   :  { %1751 = vst [vmem:[%s3295_s11 + $0x68] sm:$0xff] %v1731_v35 }
 0x1fa   :  { %v1708_v57 = vpop.f32.mrf.mxu1 }
 0x1fb   :  { %v1709_v26 = vadd.f32 %v1901_v34, %v1708_v57 }
 0x1fd   :  { %1742 = vst [vmem:[%s3295_s11 + $0x20] sm:$0xff] %v1709_v26 }
 0x202   :  { %v1710_v41 = vpop.f32.mrf.mxu1 }
 0x203   :  { %v1711_v58 = vadd.f32 %v1901_v34, %v1710_v41 }
 0x205   :  { %1743 = vst [vmem:[%s3295_s11 + $0x28] sm:$0xff] %v1711_v58 }
 0x20a   :  { %v1733_v29 = vpop.f32.mrf.mxu3 }
 0x20b   :  { %v1734_v63 = vadd.f32 %v1901_v34, %v1733_v29 }
 0x20d   :  { %1752 = vst [vmem:[%s3295_s11 + $0x70] sm:$0xff] %v1734_v63 }
 0x212   :  { %v1735_v51 = vpop.f32.mrf.mxu3 }
 0x213   :  { %v1713_v59 = vpop.f32.mrf.mxu1  ;;  %v1736_v12 = vadd.f32 %v1901_v34, %v1735_v51 }
 0x214   :  { %v1714_v0 = vadd.f32 %v1901_v34, %v1713_v59 }
 0x215   :  { %1753 = vst [vmem:[%s3295_s11 + $0x78] sm:$0xff] %v1736_v12 }
 0x216   :  { %1744 = vst [vmem:[%s3295_s11 + $0x30] sm:$0xff] %v1714_v0 }
 0x21b   :  { %v1715_v6 = vpop.f32.mrf.mxu1 }
 0x21c   :  { %v1716_v3 = vadd.f32 %v1901_v34, %v1715_v6 }
 0x21e   :  { %1745 = vst [vmem:[%s3295_s11 + $0x38] sm:$0xff] %v1716_v3 }

</bundles_post_ra>
